<compile_context>
chip_gen: v7x
topology: tpu7x:2x2x1
jax: 0.10.0
libtpu: 0.0.40
codegen_flags: <defaults>
</compile_context>

<pallas_src>
import functools

import jax
import jax.numpy as jnp
from jax.experimental import pallas as pl
from jax.experimental.pallas import tpu as pltpu

# 3x3 tap offsets (ry, rx), row-major -- matches PyTorch OIHW (ky, kx) order
# with ky = ry + 1, kx = rx + 1.
_TAPS = tuple((ry, rx) for ry in (-1, 0, 1) for rx in (-1, 0, 1))


def _edge_masks(H, W, n_images):
    """(4, n_images*H*W) f32 validity rows: [oy>0, oy<H-1, ox>0, ox<W-1]."""
    oy, ox = jnp.meshgrid(jnp.arange(H), jnp.arange(W), indexing="ij")
    oy = oy.reshape(-1)
    ox = ox.reshape(-1)
    rows = jnp.stack([oy > 0, oy < H - 1, ox > 0, ox < W - 1]).astype(jnp.float32)
    return jnp.tile(rows, (1, n_images))


def _decoder_kernel(x_ref, em_ref, w1_ref, b1_ref, w2_ref, b2_ref, w3_ref,
                    b3_ref, o_ref, *, W):
    """Fused Decoder2Mat forward for one group of images.

    x_ref  : (64, npix) f32   input features, images concatenated along lanes
    em_ref : (4, npix)  f32   edge-validity rows (periodic per image)
    w1_ref : (144, 64)  bf16  conv1 weights, tap-major (t*16+co, ci)
    b1_ref : (16, 1)    f32
    w2_ref : (36, 16)   bf16  conv2 weights, tap-major
    b2_ref : (4, 1)     f32
    w3_ref : (9, 4)     bf16  conv3 weights, tap-major
    b3_ref : (1, 1)     f32
    o_ref  : (1, npix)  f32   sigmoid output
    """
    npix = x_ref.shape[-1]

    # Build the 9 per-tap boundary masks once (center tap needs none); reused by
    # all three convs.  Rolls wrap across image boundaries inside the lane
    # window, but every wrapped/out-of-image read is zeroed by these masks.
    ym = {-1: em_ref[0:1, :], 0: None, 1: em_ref[1:2, :]}
    xm = {-1: em_ref[2:3, :], 0: None, 1: em_ref[3:4, :]}
    masks = []
    for ry, rx in _TAPS:
        a, b = ym[ry], xm[rx]
        if a is None and b is None:
            masks.append(None)
        elif a is None:
            masks.append(b)
        elif b is None:
            masks.append(a)
        else:
            masks.append(a * b)          # corner taps: combine once, reuse 3x

    def conv3x3(h, w_ref, b_ref, cout):
        """Tap-major 'same' 3x3 conv: one (9*cout, cin) x (cin, npix) MXU dot,
        then nine statically lane-shifted, boundary-masked cout-row slabs."""
        z = jnp.dot(w_ref[...], h.astype(jnp.bfloat16),
                    preferred_element_type=jnp.float32)      # (9*cout, npix) f32
        acc = None
        for t, (ry, rx) in enumerate(_TAPS):
            slab = z[t * cout:(t + 1) * cout, :]
            off = ry * W + rx
            if off != 0:
                # want shifted[p] = z_t[p + off]; jnp.roll static shift = -off.
                slab = jnp.roll(slab, -off, axis=1)
            if masks[t] is not None:
                slab = slab * masks[t]
            acc = slab if acc is None else acc + slab
        return acc + b_ref[...]

    x = x_ref[...]                                            # (64, npix) f32
    h1 = jnp.maximum(conv3x3(x, w1_ref, b1_ref, 16), 0.0)     # (16, npix)
    h2 = jnp.maximum(conv3x3(h1, w2_ref, b2_ref, 4), 0.0)     # (4, npix)
    h3 = conv3x3(h2, w3_ref, b3_ref, 1)                       # (1, npix)
    o_ref[...] = jax.nn.sigmoid(h3).astype(o_ref.dtype)


def decoder2mat_forward(x_nchw, params):
    """x_nchw: (B, 64, H, W) f32 -> (B, 1, H, W) sigmoid activations."""
    B, C, H, W = x_nchw.shape
    assert C == 64, C
    S = H * W

    # Channel-major, images concatenated along the lane axis: (64, B*S).
    x_wide = jnp.transpose(x_nchw.reshape(B, C, S), (1, 0, 2)).reshape(C, B * S)

    def tap_major(w):      # PyTorch OIHW -> (9*O, I) bf16 for the MXU
        o, i = w.shape[0], w.shape[1]
        return jnp.transpose(w, (2, 3, 0, 1)).reshape(9 * o, i).astype(jnp.bfloat16)

    w1 = tap_major(params["w1"])
    w2 = tap_major(params["w2"])
    w3 = tap_major(params["w3"])
    b1 = params["b1"].reshape(16, 1).astype(jnp.float32)
    b2 = params["b2"].reshape(4, 1).astype(jnp.float32)
    b3 = params["b3"].reshape(1, 1).astype(jnp.float32)

    # Fold bt images into each grid step so the matmul N dim (bt*S lanes) is
    # wide; keep the per-step working set to a few MiB of VMEM.
    budget_pixels = 4096
    bt = min(B, max(1, budget_pixels // S))
    while B % bt:
        bt -= 1
    if (bt * S) % 128 != 0 and bt != B:   # lane-tiling constraint fallback
        bt = B
    npix = bt * S
    em = _edge_masks(H, W, bt)            # (4, npix); identical for every step

    flops = 2 * B * S * (9 * 64 * 16 + 9 * 16 * 4 + 9 * 4 * 1)
    bytes_accessed = (4 * B * 64 * S + 4 * B * S + 4 * 4 * npix
                      + 2 * (144 * 64 + 36 * 16 + 9 * 4) + 4 * (16 + 4 + 1))

    kernel = functools.partial(_decoder_kernel, W=W)

    out_flat = pl.pallas_call(
        kernel,
        out_shape=jax.ShapeDtypeStruct((1, B * S), jnp.float32),
        grid_spec=pl.GridSpec(
            grid=(B // bt,),
            in_specs=[
                pl.BlockSpec((64, npix), lambda i: (0, i)),    # x (f32)
                pl.BlockSpec((4, npix), lambda i: (0, 0)),     # edge masks
                pl.BlockSpec((144, 64), lambda i: (0, 0)),     # w1 (bf16)
                pl.BlockSpec((16, 1), lambda i: (0, 0)),       # b1
                pl.BlockSpec((36, 16), lambda i: (0, 0)),      # w2 (bf16)
                pl.BlockSpec((4, 1), lambda i: (0, 0)),        # b2
                pl.BlockSpec((9, 4), lambda i: (0, 0)),        # w3 (bf16)
                pl.BlockSpec((1, 1), lambda i: (0, 0)),        # b3
            ],
            out_specs=pl.BlockSpec((1, npix), lambda i: (0, i)),
        ),
        compiler_params=pltpu.CompilerParams(
            dimension_semantics=("parallel",)),
        cost_estimate=pl.CostEstimate(
            flops=flops, transcendentals=B * S, bytes_accessed=bytes_accessed),
    )(x_wide, em, w1, b1, w2, b2, w3, b3)

    return out_flat.reshape(B, 1, H, W)


def image2image_forward(x_nchw, params):
    # TODO(synk): encoder (UNet3Plus) not defined in the reference; identity here.
    return decoder2mat_forward(x_nchw, params)


def init_decoder_params(key):
    """Decoder2Mat parameters in PyTorch OIHW layout."""
    k1, k2, k3, k4, k5, k6 = jax.random.split(key, 6)
    return {
        "w1": jax.random.normal(k1, (16, 64, 3, 3), jnp.float32) * 0.05,
        "b1": jax.random.normal(k4, (16,), jnp.float32) * 0.1,
        "w2": jax.random.normal(k2, (4, 16, 3, 3), jnp.float32) * 0.05,
        "b2": jax.random.normal(k5, (4,), jnp.float32) * 0.1,
        "w3": jax.random.normal(k3, (1, 4, 3, 3), jnp.float32) * 0.05,
        "b3": jax.random.normal(k6, (1,), jnp.float32) * 0.1,
    }


def _reference_forward(x, params):
    """Pure-JAX (XLA conv) reference matching PyTorch Conv2d(padding=1) semantics."""
    def conv(h, w, b):
        y = jax.lax.conv_general_dilated(
            h, w, window_strides=(1, 1), padding=((1, 1), (1, 1)),
            dimension_numbers=("NCHW", "OIHW", "NCHW"),
            precision=jax.lax.Precision.HIGHEST)
        return y + b.reshape(1, -1, 1, 1)
    h = jax.nn.relu(conv(x, params["w1"], params["b1"]))
    h = jax.nn.relu(conv(h, params["w2"], params["b2"]))
    return jax.nn.sigmoid(conv(h, params["w3"], params["b3"]))


if __name__ == "__main__":
    key = jax.random.PRNGKey(0)
    kx, kp = jax.random.split(key)

    B, C, H, W = 2, 64, 16, 16
    x = jax.random.normal(kx, (B, C, H, W), jnp.float32)
    params = init_decoder_params(kp)

    out = jax.jit(image2image_forward)(x, params)
    out = jax.block_until_ready(out)

    assert out.shape == (B, 1, H, W), out.shape
    assert bool(jnp.all((out >= 0.0) & (out <= 1.0))), "sigmoid range violated"

    ref = _reference_forward(x, params)
    err = float(jnp.max(jnp.abs(out - ref)))
    # bf16 MXU operands with f32 accumulation: expected max-abs error ~1e-3.
    assert err < 5e-3, f"mismatch vs reference conv: max abs err {err}"

    print("KERNEL_OK")
</pallas_src>

<mosaic_0001>
module attributes {stable_mosaic.version = 11 : i64} {
  func.func @_decoder_kernel(%arg0: i32, %arg1: memref<64x512xf32, #tpu.memory_space<vmem>>, %arg2: memref<4x512xf32, #tpu.memory_space<vmem>>, %arg3: memref<144x64xbf16, #tpu.memory_space<vmem>>, %arg4: memref<16x1xf32, #tpu.memory_space<vmem>>, %arg5: memref<36x16xbf16, #tpu.memory_space<vmem>>, %arg6: memref<4x1xf32, #tpu.memory_space<vmem>>, %arg7: memref<9x4xbf16, #tpu.memory_space<vmem>>, %arg8: memref<1x1xf32, #tpu.memory_space<vmem>>, %arg9: memref<1x512xf32, #tpu.memory_space<vmem>>) attributes {dimension_semantics = [#tpu.dimension_semantics<parallel>], iteration_bounds = array<i64: 1>, scalar_prefetch = 0 : i64, scratch_operands = 0 : i64, tpu.core_type = #tpu.core_type<tc>, window_params = [{transform_indices = @transform_0, window_bounds = array<i64: 64, 512>}, {pipeline_mode = #tpu.pipeline_mode<synchronous>, transform_indices = @transform_1, window_bounds = array<i64: 4, 512>}, {pipeline_mode = #tpu.pipeline_mode<synchronous>, transform_indices = @transform_2, window_bounds = array<i64: 144, 64>}, {pipeline_mode = #tpu.pipeline_mode<synchronous>, transform_indices = @transform_3, window_bounds = array<i64: 16, 1>}, {pipeline_mode = #tpu.pipeline_mode<synchronous>, transform_indices = @transform_4, window_bounds = array<i64: 36, 16>}, {pipeline_mode = #tpu.pipeline_mode<synchronous>, transform_indices = @transform_5, window_bounds = array<i64: 4, 1>}, {pipeline_mode = #tpu.pipeline_mode<synchronous>, transform_indices = @transform_6, window_bounds = array<i64: 9, 4>}, {pipeline_mode = #tpu.pipeline_mode<synchronous>, transform_indices = @transform_7, window_bounds = array<i64: 1, 1>}, {transform_indices = @transform_8, window_bounds = array<i64: 1, 512>}]} {
    %c0 = arith.constant 0 : index
    %c0_0 = arith.constant 0 : index
    %0 = vector.load %arg2[%c0, %c0_0] : memref<4x512xf32, #tpu.memory_space<vmem>>, vector<1x512xf32>
    %c1 = arith.constant 1 : index
    %c0_1 = arith.constant 0 : index
    %1 = vector.load %arg2[%c1, %c0_1] : memref<4x512xf32, #tpu.memory_space<vmem>>, vector<1x512xf32>
    %c2 = arith.constant 2 : index
    %c0_2 = arith.constant 0 : index
    %2 = vector.load %arg2[%c2, %c0_2] : memref<4x512xf32, #tpu.memory_space<vmem>>, vector<1x512xf32>
    %c3 = arith.constant 3 : index
    %c0_3 = arith.constant 0 : index
    %3 = vector.load %arg2[%c3, %c0_3] : memref<4x512xf32, #tpu.memory_space<vmem>>, vector<1x512xf32>
    %4 = arith.mulf %0, %2 : vector<1x512xf32>
    %5 = arith.mulf %0, %3 : vector<1x512xf32>
    %6 = arith.mulf %1, %2 : vector<1x512xf32>
    %7 = arith.mulf %1, %3 : vector<1x512xf32>
    %c0_4 = arith.constant 0 : index
    %c0_5 = arith.constant 0 : index
    %8 = vector.load %arg1[%c0_4, %c0_5] : memref<64x512xf32, #tpu.memory_space<vmem>>, vector<64x512xf32>
    %c0_6 = arith.constant 0 : index
    %c0_7 = arith.constant 0 : index
    %9 = vector.load %arg3[%c0_6, %c0_7] : memref<144x64xbf16, #tpu.memory_space<vmem>>, vector<144x64xbf16>
    %10 = arith.truncf %8 : vector<64x512xf32> to vector<64x512xbf16>
    %cst = arith.constant dense<0.000000e+00> : vector<144x512xf32>
    %11 = tpu.matmul %9, %10, %cst {dimension_numbers = #tpu.dot_dimension_numbers<[1], [0], [0], [1], [0, 0, 1, 1], [], []>} : vector<144x64xbf16>, vector<64x512xbf16>, vector<144x512xf32> -> vector<144x512xf32>
    %12 = vector.extract_strided_slice %11 {offsets = [0, 0], sizes = [16, 512], strides = [1, 1]} : vector<144x512xf32> to vector<16x512xf32>
    %13 = vector.extract_strided_slice %12 {offsets = [0, 495], sizes = [16, 17], strides = [1, 1]} : vector<16x512xf32> to vector<16x17xf32>
    %14 = vector.extract_strided_slice %12 {offsets = [0, 0], sizes = [16, 495], strides = [1, 1]} : vector<16x512xf32> to vector<16x495xf32>
    %15 = tpu.concatenate %13, %14 in 1 : vector<16x17xf32>, vector<16x495xf32> -> vector<16x512xf32>
    %16 = vector.broadcast %4 : vector<1x512xf32> to vector<16x512xf32>
    %17 = arith.mulf %15, %16 : vector<16x512xf32>
    %18 = vector.extract_strided_slice %11 {offsets = [16, 0], sizes = [16, 512], strides = [1, 1]} : vector<144x512xf32> to vector<16x512xf32>
    %19 = vector.extract_strided_slice %18 {offsets = [0, 496], sizes = [16, 16], strides = [1, 1]} : vector<16x512xf32> to vector<16x16xf32>
    %20 = vector.extract_strided_slice %18 {offsets = [0, 0], sizes = [16, 496], strides = [1, 1]} : vector<16x512xf32> to vector<16x496xf32>
    %21 = tpu.concatenate %19, %20 in 1 : vector<16x16xf32>, vector<16x496xf32> -> vector<16x512xf32>
    %22 = vector.broadcast %0 : vector<1x512xf32> to vector<16x512xf32>
    %23 = arith.mulf %21, %22 : vector<16x512xf32>
    %24 = arith.addf %17, %23 : vector<16x512xf32>
    %25 = vector.extract_strided_slice %11 {offsets = [32, 0], sizes = [16, 512], strides = [1, 1]} : vector<144x512xf32> to vector<16x512xf32>
    %26 = vector.extract_strided_slice %25 {offsets = [0, 497], sizes = [16, 15], strides = [1, 1]} : vector<16x512xf32> to vector<16x15xf32>
    %27 = vector.extract_strided_slice %25 {offsets = [0, 0], sizes = [16, 497], strides = [1, 1]} : vector<16x512xf32> to vector<16x497xf32>
    %28 = tpu.concatenate %26, %27 in 1 : vector<16x15xf32>, vector<16x497xf32> -> vector<16x512xf32>
    %29 = vector.broadcast %5 : vector<1x512xf32> to vector<16x512xf32>
    %30 = arith.mulf %28, %29 : vector<16x512xf32>
    %31 = arith.addf %24, %30 : vector<16x512xf32>
    %32 = vector.extract_strided_slice %11 {offsets = [48, 0], sizes = [16, 512], strides = [1, 1]} : vector<144x512xf32> to vector<16x512xf32>
    %33 = vector.extract_strided_slice %32 {offsets = [0, 511], sizes = [16, 1], strides = [1, 1]} : vector<16x512xf32> to vector<16x1xf32>
    %34 = vector.extract_strided_slice %32 {offsets = [0, 0], sizes = [16, 511], strides = [1, 1]} : vector<16x512xf32> to vector<16x511xf32>
    %35 = tpu.concatenate %33, %34 in 1 : vector<16x1xf32>, vector<16x511xf32> -> vector<16x512xf32>
    %36 = vector.broadcast %2 : vector<1x512xf32> to vector<16x512xf32>
    %37 = arith.mulf %35, %36 : vector<16x512xf32>
    %38 = arith.addf %31, %37 : vector<16x512xf32>
    %39 = vector.extract_strided_slice %11 {offsets = [64, 0], sizes = [16, 512], strides = [1, 1]} : vector<144x512xf32> to vector<16x512xf32>
    %40 = arith.addf %38, %39 : vector<16x512xf32>
    %41 = vector.extract_strided_slice %11 {offsets = [80, 0], sizes = [16, 512], strides = [1, 1]} : vector<144x512xf32> to vector<16x512xf32>
    %42 = vector.extract_strided_slice %41 {offsets = [0, 1], sizes = [16, 511], strides = [1, 1]} : vector<16x512xf32> to vector<16x511xf32>
    %43 = vector.extract_strided_slice %41 {offsets = [0, 0], sizes = [16, 1], strides = [1, 1]} : vector<16x512xf32> to vector<16x1xf32>
    %44 = tpu.concatenate %42, %43 in 1 : vector<16x511xf32>, vector<16x1xf32> -> vector<16x512xf32>
    %45 = vector.broadcast %3 : vector<1x512xf32> to vector<16x512xf32>
    %46 = arith.mulf %44, %45 : vector<16x512xf32>
    %47 = arith.addf %40, %46 : vector<16x512xf32>
    %48 = vector.extract_strided_slice %11 {offsets = [96, 0], sizes = [16, 512], strides = [1, 1]} : vector<144x512xf32> to vector<16x512xf32>
    %49 = vector.extract_strided_slice %48 {offsets = [0, 15], sizes = [16, 497], strides = [1, 1]} : vector<16x512xf32> to vector<16x497xf32>
    %50 = vector.extract_strided_slice %48 {offsets = [0, 0], sizes = [16, 15], strides = [1, 1]} : vector<16x512xf32> to vector<16x15xf32>
    %51 = tpu.concatenate %49, %50 in 1 : vector<16x497xf32>, vector<16x15xf32> -> vector<16x512xf32>
    %52 = vector.broadcast %6 : vector<1x512xf32> to vector<16x512xf32>
    %53 = arith.mulf %51, %52 : vector<16x512xf32>
    %54 = arith.addf %47, %53 : vector<16x512xf32>
    %55 = vector.extract_strided_slice %11 {offsets = [112, 0], sizes = [16, 512], strides = [1, 1]} : vector<144x512xf32> to vector<16x512xf32>
    %56 = vector.extract_strided_slice %55 {offsets = [0, 16], sizes = [16, 496], strides = [1, 1]} : vector<16x512xf32> to vector<16x496xf32>
    %57 = vector.extract_strided_slice %55 {offsets = [0, 0], sizes = [16, 16], strides = [1, 1]} : vector<16x512xf32> to vector<16x16xf32>
    %58 = tpu.concatenate %56, %57 in 1 : vector<16x496xf32>, vector<16x16xf32> -> vector<16x512xf32>
    %59 = vector.broadcast %1 : vector<1x512xf32> to vector<16x512xf32>
    %60 = arith.mulf %58, %59 : vector<16x512xf32>
    %61 = arith.addf %54, %60 : vector<16x512xf32>
    %62 = vector.extract_strided_slice %11 {offsets = [128, 0], sizes = [16, 512], strides = [1, 1]} : vector<144x512xf32> to vector<16x512xf32>
    %63 = vector.extract_strided_slice %62 {offsets = [0, 17], sizes = [16, 495], strides = [1, 1]} : vector<16x512xf32> to vector<16x495xf32>
    %64 = vector.extract_strided_slice %62 {offsets = [0, 0], sizes = [16, 17], strides = [1, 1]} : vector<16x512xf32> to vector<16x17xf32>
    %65 = tpu.concatenate %63, %64 in 1 : vector<16x495xf32>, vector<16x17xf32> -> vector<16x512xf32>
    %66 = vector.broadcast %7 : vector<1x512xf32> to vector<16x512xf32>
    %67 = arith.mulf %65, %66 : vector<16x512xf32>
    %68 = arith.addf %61, %67 : vector<16x512xf32>
    %c0_8 = arith.constant 0 : index
    %c0_9 = arith.constant 0 : index
    %69 = vector.load %arg4[%c0_8, %c0_9] : memref<16x1xf32, #tpu.memory_space<vmem>>, vector<16x1xf32>
    %70 = vector.broadcast %69 : vector<16x1xf32> to vector<16x512xf32>
    %71 = arith.addf %68, %70 : vector<16x512xf32>
    %cst_10 = arith.constant 0.000000e+00 : f32
    %72 = vector.broadcast %cst_10 : f32 to vector<16x512xf32>
    %73 = arith.maximumf %71, %72 : vector<16x512xf32>
    %c0_11 = arith.constant 0 : index
    %c0_12 = arith.constant 0 : index
    %74 = vector.load %arg5[%c0_11, %c0_12] : memref<36x16xbf16, #tpu.memory_space<vmem>>, vector<36x16xbf16>
    %75 = arith.truncf %73 : vector<16x512xf32> to vector<16x512xbf16>
    %cst_13 = arith.constant dense<0.000000e+00> : vector<36x512xf32>
    %76 = tpu.matmul %74, %75, %cst_13 {dimension_numbers = #tpu.dot_dimension_numbers<[1], [0], [0], [1], [0, 0, 1, 1], [], []>} : vector<36x16xbf16>, vector<16x512xbf16>, vector<36x512xf32> -> vector<36x512xf32>
    %77 = vector.extract_strided_slice %76 {offsets = [0, 0], sizes = [4, 512], strides = [1, 1]} : vector<36x512xf32> to vector<4x512xf32>
    %78 = vector.extract_strided_slice %77 {offsets = [0, 495], sizes = [4, 17], strides = [1, 1]} : vector<4x512xf32> to vector<4x17xf32>
    %79 = vector.extract_strided_slice %77 {offsets = [0, 0], sizes = [4, 495], strides = [1, 1]} : vector<4x512xf32> to vector<4x495xf32>
    %80 = tpu.concatenate %78, %79 in 1 : vector<4x17xf32>, vector<4x495xf32> -> vector<4x512xf32>
    %81 = vector.broadcast %4 : vector<1x512xf32> to vector<4x512xf32>
    %82 = arith.mulf %80, %81 : vector<4x512xf32>
    %83 = vector.extract_strided_slice %76 {offsets = [4, 0], sizes = [4, 512], strides = [1, 1]} : vector<36x512xf32> to vector<4x512xf32>
    %84 = vector.extract_strided_slice %83 {offsets = [0, 496], sizes = [4, 16], strides = [1, 1]} : vector<4x512xf32> to vector<4x16xf32>
    %85 = vector.extract_strided_slice %83 {offsets = [0, 0], sizes = [4, 496], strides = [1, 1]} : vector<4x512xf32> to vector<4x496xf32>
    %86 = tpu.concatenate %84, %85 in 1 : vector<4x16xf32>, vector<4x496xf32> -> vector<4x512xf32>
    %87 = vector.broadcast %0 : vector<1x512xf32> to vector<4x512xf32>
    %88 = arith.mulf %86, %87 : vector<4x512xf32>
    %89 = arith.addf %82, %88 : vector<4x512xf32>
    %90 = vector.extract_strided_slice %76 {offsets = [8, 0], sizes = [4, 512], strides = [1, 1]} : vector<36x512xf32> to vector<4x512xf32>
    %91 = vector.extract_strided_slice %90 {offsets = [0, 497], sizes = [4, 15], strides = [1, 1]} : vector<4x512xf32> to vector<4x15xf32>
    %92 = vector.extract_strided_slice %90 {offsets = [0, 0], sizes = [4, 497], strides = [1, 1]} : vector<4x512xf32> to vector<4x497xf32>
    %93 = tpu.concatenate %91, %92 in 1 : vector<4x15xf32>, vector<4x497xf32> -> vector<4x512xf32>
    %94 = vector.broadcast %5 : vector<1x512xf32> to vector<4x512xf32>
    %95 = arith.mulf %93, %94 : vector<4x512xf32>
    %96 = arith.addf %89, %95 : vector<4x512xf32>
    %97 = vector.extract_strided_slice %76 {offsets = [12, 0], sizes = [4, 512], strides = [1, 1]} : vector<36x512xf32> to vector<4x512xf32>
    %98 = vector.extract_strided_slice %97 {offsets = [0, 511], sizes = [4, 1], strides = [1, 1]} : vector<4x512xf32> to vector<4x1xf32>
    %99 = vector.extract_strided_slice %97 {offsets = [0, 0], sizes = [4, 511], strides = [1, 1]} : vector<4x512xf32> to vector<4x511xf32>
    %100 = tpu.concatenate %98, %99 in 1 : vector<4x1xf32>, vector<4x511xf32> -> vector<4x512xf32>
    %101 = vector.broadcast %2 : vector<1x512xf32> to vector<4x512xf32>
    %102 = arith.mulf %100, %101 : vector<4x512xf32>
    %103 = arith.addf %96, %102 : vector<4x512xf32>
    %104 = vector.extract_strided_slice %76 {offsets = [16, 0], sizes = [4, 512], strides = [1, 1]} : vector<36x512xf32> to vector<4x512xf32>
    %105 = arith.addf %103, %104 : vector<4x512xf32>
    %106 = vector.extract_strided_slice %76 {offsets = [20, 0], sizes = [4, 512], strides = [1, 1]} : vector<36x512xf32> to vector<4x512xf32>
    %107 = vector.extract_strided_slice %106 {offsets = [0, 1], sizes = [4, 511], strides = [1, 1]} : vector<4x512xf32> to vector<4x511xf32>
    %108 = vector.extract_strided_slice %106 {offsets = [0, 0], sizes = [4, 1], strides = [1, 1]} : vector<4x512xf32> to vector<4x1xf32>
    %109 = tpu.concatenate %107, %108 in 1 : vector<4x511xf32>, vector<4x1xf32> -> vector<4x512xf32>
    %110 = vector.broadcast %3 : vector<1x512xf32> to vector<4x512xf32>
    %111 = arith.mulf %109, %110 : vector<4x512xf32>
    %112 = arith.addf %105, %111 : vector<4x512xf32>
    %113 = vector.extract_strided_slice %76 {offsets = [24, 0], sizes = [4, 512], strides = [1, 1]} : vector<36x512xf32> to vector<4x512xf32>
    %114 = vector.extract_strided_slice %113 {offsets = [0, 15], sizes = [4, 497], strides = [1, 1]} : vector<4x512xf32> to vector<4x497xf32>
    %115 = vector.extract_strided_slice %113 {offsets = [0, 0], sizes = [4, 15], strides = [1, 1]} : vector<4x512xf32> to vector<4x15xf32>
    %116 = tpu.concatenate %114, %115 in 1 : vector<4x497xf32>, vector<4x15xf32> -> vector<4x512xf32>
    %117 = vector.broadcast %6 : vector<1x512xf32> to vector<4x512xf32>
    %118 = arith.mulf %116, %117 : vector<4x512xf32>
    %119 = arith.addf %112, %118 : vector<4x512xf32>
    %120 = vector.extract_strided_slice %76 {offsets = [28, 0], sizes = [4, 512], strides = [1, 1]} : vector<36x512xf32> to vector<4x512xf32>
    %121 = vector.extract_strided_slice %120 {offsets = [0, 16], sizes = [4, 496], strides = [1, 1]} : vector<4x512xf32> to vector<4x496xf32>
    %122 = vector.extract_strided_slice %120 {offsets = [0, 0], sizes = [4, 16], strides = [1, 1]} : vector<4x512xf32> to vector<4x16xf32>
    %123 = tpu.concatenate %121, %122 in 1 : vector<4x496xf32>, vector<4x16xf32> -> vector<4x512xf32>
    %124 = vector.broadcast %1 : vector<1x512xf32> to vector<4x512xf32>
    %125 = arith.mulf %123, %124 : vector<4x512xf32>
    %126 = arith.addf %119, %125 : vector<4x512xf32>
    %127 = vector.extract_strided_slice %76 {offsets = [32, 0], sizes = [4, 512], strides = [1, 1]} : vector<36x512xf32> to vector<4x512xf32>
    %128 = vector.extract_strided_slice %127 {offsets = [0, 17], sizes = [4, 495], strides = [1, 1]} : vector<4x512xf32> to vector<4x495xf32>
    %129 = vector.extract_strided_slice %127 {offsets = [0, 0], sizes = [4, 17], strides = [1, 1]} : vector<4x512xf32> to vector<4x17xf32>
    %130 = tpu.concatenate %128, %129 in 1 : vector<4x495xf32>, vector<4x17xf32> -> vector<4x512xf32>
    %131 = vector.broadcast %7 : vector<1x512xf32> to vector<4x512xf32>
    %132 = arith.mulf %130, %131 : vector<4x512xf32>
    %133 = arith.addf %126, %132 : vector<4x512xf32>
    %c0_14 = arith.constant 0 : index
    %c0_15 = arith.constant 0 : index
    %134 = vector.load %arg6[%c0_14, %c0_15] : memref<4x1xf32, #tpu.memory_space<vmem>>, vector<4x1xf32>
    %135 = vector.broadcast %134 : vector<4x1xf32> to vector<4x512xf32>
    %136 = arith.addf %133, %135 : vector<4x512xf32>
    %cst_16 = arith.constant 0.000000e+00 : f32
    %137 = vector.broadcast %cst_16 : f32 to vector<4x512xf32>
    %138 = arith.maximumf %136, %137 : vector<4x512xf32>
    %c0_17 = arith.constant 0 : index
    %c0_18 = arith.constant 0 : index
    %139 = vector.load %arg7[%c0_17, %c0_18] : memref<9x4xbf16, #tpu.memory_space<vmem>>, vector<9x4xbf16>
    %140 = arith.truncf %138 : vector<4x512xf32> to vector<4x512xbf16>
    %cst_19 = arith.constant dense<0.000000e+00> : vector<9x512xf32>
    %141 = tpu.matmul %139, %140, %cst_19 {dimension_numbers = #tpu.dot_dimension_numbers<[1], [0], [0], [1], [0, 0, 1, 1], [], []>} : vector<9x4xbf16>, vector<4x512xbf16>, vector<9x512xf32> -> vector<9x512xf32>
    %142 = vector.extract_strided_slice %141 {offsets = [0, 0], sizes = [1, 512], strides = [1, 1]} : vector<9x512xf32> to vector<1x512xf32>
    %143 = vector.extract_strided_slice %142 {offsets = [0, 495], sizes = [1, 17], strides = [1, 1]} : vector<1x512xf32> to vector<1x17xf32>
    %144 = vector.extract_strided_slice %142 {offsets = [0, 0], sizes = [1, 495], strides = [1, 1]} : vector<1x512xf32> to vector<1x495xf32>
    %145 = tpu.concatenate %143, %144 in 1 : vector<1x17xf32>, vector<1x495xf32> -> vector<1x512xf32>
    %146 = arith.mulf %145, %4 : vector<1x512xf32>
    %147 = vector.extract_strided_slice %141 {offsets = [1, 0], sizes = [1, 512], strides = [1, 1]} : vector<9x512xf32> to vector<1x512xf32>
    %148 = vector.extract_strided_slice %147 {offsets = [0, 496], sizes = [1, 16], strides = [1, 1]} : vector<1x512xf32> to vector<1x16xf32>
    %149 = vector.extract_strided_slice %147 {offsets = [0, 0], sizes = [1, 496], strides = [1, 1]} : vector<1x512xf32> to vector<1x496xf32>
    %150 = tpu.concatenate %148, %149 in 1 : vector<1x16xf32>, vector<1x496xf32> -> vector<1x512xf32>
    %151 = arith.mulf %150, %0 : vector<1x512xf32>
    %152 = arith.addf %146, %151 : vector<1x512xf32>
    %153 = vector.extract_strided_slice %141 {offsets = [2, 0], sizes = [1, 512], strides = [1, 1]} : vector<9x512xf32> to vector<1x512xf32>
    %154 = vector.extract_strided_slice %153 {offsets = [0, 497], sizes = [1, 15], strides = [1, 1]} : vector<1x512xf32> to vector<1x15xf32>
    %155 = vector.extract_strided_slice %153 {offsets = [0, 0], sizes = [1, 497], strides = [1, 1]} : vector<1x512xf32> to vector<1x497xf32>
    %156 = tpu.concatenate %154, %155 in 1 : vector<1x15xf32>, vector<1x497xf32> -> vector<1x512xf32>
    %157 = arith.mulf %156, %5 : vector<1x512xf32>
    %158 = arith.addf %152, %157 : vector<1x512xf32>
    %159 = vector.extract_strided_slice %141 {offsets = [3, 0], sizes = [1, 512], strides = [1, 1]} : vector<9x512xf32> to vector<1x512xf32>
    %160 = vector.extract_strided_slice %159 {offsets = [0, 511], sizes = [1, 1], strides = [1, 1]} : vector<1x512xf32> to vector<1x1xf32>
    %161 = vector.extract_strided_slice %159 {offsets = [0, 0], sizes = [1, 511], strides = [1, 1]} : vector<1x512xf32> to vector<1x511xf32>
    %162 = tpu.concatenate %160, %161 in 1 : vector<1x1xf32>, vector<1x511xf32> -> vector<1x512xf32>
    %163 = arith.mulf %162, %2 : vector<1x512xf32>
    %164 = arith.addf %158, %163 : vector<1x512xf32>
    %165 = vector.extract_strided_slice %141 {offsets = [4, 0], sizes = [1, 512], strides = [1, 1]} : vector<9x512xf32> to vector<1x512xf32>
    %166 = arith.addf %164, %165 : vector<1x512xf32>
    %167 = vector.extract_strided_slice %141 {offsets = [5, 0], sizes = [1, 512], strides = [1, 1]} : vector<9x512xf32> to vector<1x512xf32>
    %168 = vector.extract_strided_slice %167 {offsets = [0, 1], sizes = [1, 511], strides = [1, 1]} : vector<1x512xf32> to vector<1x511xf32>
    %169 = vector.extract_strided_slice %167 {offsets = [0, 0], sizes = [1, 1], strides = [1, 1]} : vector<1x512xf32> to vector<1x1xf32>
    %170 = tpu.concatenate %168, %169 in 1 : vector<1x511xf32>, vector<1x1xf32> -> vector<1x512xf32>
    %171 = arith.mulf %170, %3 : vector<1x512xf32>
    %172 = arith.addf %166, %171 : vector<1x512xf32>
    %173 = vector.extract_strided_slice %141 {offsets = [6, 0], sizes = [1, 512], strides = [1, 1]} : vector<9x512xf32> to vector<1x512xf32>
    %174 = vector.extract_strided_slice %173 {offsets = [0, 15], sizes = [1, 497], strides = [1, 1]} : vector<1x512xf32> to vector<1x497xf32>
    %175 = vector.extract_strided_slice %173 {offsets = [0, 0], sizes = [1, 15], strides = [1, 1]} : vector<1x512xf32> to vector<1x15xf32>
    %176 = tpu.concatenate %174, %175 in 1 : vector<1x497xf32>, vector<1x15xf32> -> vector<1x512xf32>
    %177 = arith.mulf %176, %6 : vector<1x512xf32>
    %178 = arith.addf %172, %177 : vector<1x512xf32>
    %179 = vector.extract_strided_slice %141 {offsets = [7, 0], sizes = [1, 512], strides = [1, 1]} : vector<9x512xf32> to vector<1x512xf32>
    %180 = vector.extract_strided_slice %179 {offsets = [0, 16], sizes = [1, 496], strides = [1, 1]} : vector<1x512xf32> to vector<1x496xf32>
    %181 = vector.extract_strided_slice %179 {offsets = [0, 0], sizes = [1, 16], strides = [1, 1]} : vector<1x512xf32> to vector<1x16xf32>
    %182 = tpu.concatenate %180, %181 in 1 : vector<1x496xf32>, vector<1x16xf32> -> vector<1x512xf32>
    %183 = arith.mulf %182, %1 : vector<1x512xf32>
    %184 = arith.addf %178, %183 : vector<1x512xf32>
    %185 = vector.extract_strided_slice %141 {offsets = [8, 0], sizes = [1, 512], strides = [1, 1]} : vector<9x512xf32> to vector<1x512xf32>
    %186 = vector.extract_strided_slice %185 {offsets = [0, 17], sizes = [1, 495], strides = [1, 1]} : vector<1x512xf32> to vector<1x495xf32>
    %187 = vector.extract_strided_slice %185 {offsets = [0, 0], sizes = [1, 17], strides = [1, 1]} : vector<1x512xf32> to vector<1x17xf32>
    %188 = tpu.concatenate %186, %187 in 1 : vector<1x495xf32>, vector<1x17xf32> -> vector<1x512xf32>
    %189 = arith.mulf %188, %7 : vector<1x512xf32>
    %190 = arith.addf %184, %189 : vector<1x512xf32>
    %c0_20 = arith.constant 0 : index
    %c0_21 = arith.constant 0 : index
    %191 = vector.load %arg8[%c0_20, %c0_21] : memref<1x1xf32, #tpu.memory_space<vmem>>, vector<1x1xf32>
    %192 = vector.broadcast %191 : vector<1x1xf32> to vector<1x512xf32>
    %193 = arith.addf %190, %192 : vector<1x512xf32>
    %194 = arith.negf %193 : vector<1x512xf32>
    %195 = math.exp %194 : vector<1x512xf32>
    %cst_22 = arith.constant 1.000000e+00 : f32
    %196 = vector.broadcast %cst_22 : f32 to vector<1x512xf32>
    %197 = arith.addf %196, %195 : vector<1x512xf32>
    %198 = arith.divf %196, %197 : vector<1x512xf32>
    %c0_23 = arith.constant 0 : index
    %c0_24 = arith.constant 0 : index
    %199 = vector.load %arg9[%c0_23, %c0_24] : memref<1x512xf32, #tpu.memory_space<vmem>>, vector<1x512xf32>
    tpu.vector_store %arg9[%c0_23, %c0_24], %198 {strides = array<i32>} : memref<1x512xf32, #tpu.memory_space<vmem>>, vector<1x512xf32>,
    return
  }
  func.func @transform_0(%arg0: i32) -> (i32, i32) {
    %c0_i32 = arith.constant 0 : i32
    %c0_i32_0 = arith.constant 0 : i32
    return %c0_i32, %arg0 : i32, i32
  }
  func.func @transform_1(%arg0: i32) -> (i32, i32) {
    %c0_i32 = arith.constant 0 : i32
    %c0_i32_0 = arith.constant 0 : i32
    %c0_i32_1 = arith.constant 0 : i32
    return %c0_i32, %c0_i32_0 : i32, i32
  }
  func.func @transform_2(%arg0: i32) -> (i32, i32) {
    %c0_i32 = arith.constant 0 : i32
    %c0_i32_0 = arith.constant 0 : i32
    %c0_i32_1 = arith.constant 0 : i32
    return %c0_i32, %c0_i32_0 : i32, i32
  }
  func.func @transform_3(%arg0: i32) -> (i32, i32) {
    %c0_i32 = arith.constant 0 : i32
    %c0_i32_0 = arith.constant 0 : i32
    %c0_i32_1 = arith.constant 0 : i32
    return %c0_i32, %c0_i32_0 : i32, i32
  }
  func.func @transform_4(%arg0: i32) -> (i32, i32) {
    %c0_i32 = arith.constant 0 : i32
    %c0_i32_0 = arith.constant 0 : i32
    %c0_i32_1 = arith.constant 0 : i32
    return %c0_i32, %c0_i32_0 : i32, i32
  }
  func.func @transform_5(%arg0: i32) -> (i32, i32) {
    %c0_i32 = arith.constant 0 : i32
    %c0_i32_0 = arith.constant 0 : i32
    %c0_i32_1 = arith.constant 0 : i32
    return %c0_i32, %c0_i32_0 : i32, i32
  }
  func.func @transform_6(%arg0: i32) -> (i32, i32) {
    %c0_i32 = arith.constant 0 : i32
    %c0_i32_0 = arith.constant 0 : i32
    %c0_i32_1 = arith.constant 0 : i32
    return %c0_i32, %c0_i32_0 : i32, i32
  }
  func.func @transform_7(%arg0: i32) -> (i32, i32) {
    %c0_i32 = arith.constant 0 : i32
    %c0_i32_0 = arith.constant 0 : i32
    %c0_i32_1 = arith.constant 0 : i32
    return %c0_i32, %c0_i32_0 : i32, i32
  }
  func.func @transform_8(%arg0: i32) -> (i32, i32) {
    %c0_i32 = arith.constant 0 : i32
    %c0_i32_0 = arith.constant 0 : i32
    return %c0_i32, %arg0 : i32, i32
  }
}

</mosaic_0001>

<bundles_post_ra>
// kernel: image2image_forward.1
= control target key start
LH: loop header
LB: loop body
LE: loop exit
PB: predicated region body
PF: predicated region fallthrough
CT: control target
= control target key end

     0   :  { %v3227_v3 = vmov 0   ;;  %vm154_vm0 = vcmask 523264   ;;  %s2099_s23 = smov 17   ;;  %s2101_s24 = smov 15   ;;  %vm454_vm1 = vcmask 138240   ;;  %vm526_vm2 = vcmask 130048   ;;  %s3217_s0 = inlined_call_operand.vmem [shape: f32[64,512], index: 0, kind: input, shape index: {}]   ;;  %s3218_s2 = inlined_call_operand.vmem [shape: bf16[144,64], index: 2, kind: input, shape index: {}]   ;;  %s3219_s3 = inlined_call_operand.vmem [shape: f32[16,1], index: 3, kind: input, shape index: {}]   ;;  %s3220_s5 = inlined_call_operand.vmem [shape: f32[4,1], index: 5, kind: input, shape index: {}]   ;;  %s3221_s4 = inlined_call_operand.vmem [shape: bf16[36,16], index: 4, kind: input, shape index: {}]   ;;  %s3222_s1 = inlined_call_operand.vmem [shape: f32[4,512], index: 1, kind: input, shape index: {}]   ;;  %s3223_s6 = inlined_call_operand.vmem [shape: bf16[9,4], index: 6, kind: input, shape index: {}]   ;;  %s3224_s7 = inlined_call_operand.<no memory space> [shape: f32[1,1], index: 7, kind: input, shape index: {}]   ;;  %s3225_s8 = inlined_call_operand.vmem [shape: f32[1,512], index: 8, kind: output, shape index: {}]  }
   0x1   :  { %v44_v0 = vld [vmem:[%s3217_s0 + $0x8] sm:$0xff]  ;;  %v46_v2 = vld [vmem:[%s3217_s0 + $0x18] sm:$0xff]  ;;  %214 = vmatprep.mubr.bf16.mxu0 %v3227_v3  ;;  %337 = vmatprep.mubr.bf16.mxu1 %v3227_v3  ;;  %v43_v6 = vld [vmem:[%s3217_s0] sm:$0xff]  ;;  %s2102_s25 = smov 1   ;;  %s2103_s26 = smov 127   ;;  %vm606_vm3 = vcmask 121856  }
   0x2   :  { %v48_v1 = vld [vmem:[%s3217_s0 + $0x28] sm:$0xff]  ;;  %v50_v5 = vld [vmem:[%s3217_s0 + $0x38] sm:$0xff]  ;;  %v47_v7 = vld [vmem:[%s3217_s0 + $0x20] sm:$0xff]  ;;  %2068 = vset.pattern.permute.xlu1 %v3227_v3  ;;  %2067 = vset.pattern.permute.xlu0 %v3227_v3  ;;  %s2104_s27 = smov 113   ;;  %s2105_s28 = smov 112   ;;  %vm686_vm4 = vcmask 7168  }
   0x3   :  { %v94_v4 = vpack.c.bf16 %v48_v1, %v44_v0  ;;  %v96_v8 = vpack.c.bf16 %v50_v5, %v46_v2  ;;  %v93_v9 = vpack.c.bf16 %v47_v7, %v43_v6  ;;  %v45_v10 = vld [vmem:[%s3217_s0 + $0x10] sm:$0xff]  ;;  %v52_v12 = vld [vmem:[%s3217_s0 + $0x48] sm:$0xff]  ;;  %v54_v15 = vld [vmem:[%s3217_s0 + $0x58] sm:$0xff]  ;;  %vm772_vm5 = vcmask 1039360  }
   0x4   :  { %v49_v11 = vld [vmem:[%s3217_s0 + $0x30] sm:$0xff]  ;;  %v56_v14 = vld [vmem:[%s3217_s0 + $0x68] sm:$0xff]  ;;  %v58_v16 = vld [vmem:[%s3217_s0 + $0x78] sm:$0xff]  ;;  %vm852_vm6 = vcmask 924672   ;;  %vm932_vm7 = vcmask 916480   ;;  %vm1012_vm8 = vcmask 908288  }
   0x5   :  { %182 = vmatprep.subr.bf16.mxu0 %v94_v4  ;;  %v95_v13 = vpack.c.bf16 %v49_v11, %v45_v10  ;;  %305 = vmatprep.subr.bf16.mxu1 %v96_v8  ;;  %v98_v17 = vpack.c.bf16 %v56_v14, %v52_v12  ;;  %v100_v18 = vpack.c.bf16 %v58_v16, %v54_v15  ;;  %v51_v19 = vld [vmem:[%s3217_s0 + $0x40] sm:$0xff]  ;;  %v53_v21 = vld [vmem:[%s3217_s0 + $0x50] sm:$0xff]  ;;  %v60_v24 = vld [vmem:[%s3217_s0 + $0x88] sm:$0xff]  ;;  %vm1546_vm9 = vcmask 1041408  }
   0x6   :  { %183 = vmatpush1.bf16.msra.mxu0 %v93_v9  ;;  %v55_v20 = vld [vmem:[%s3217_s0 + $0x60] sm:$0xff]  ;;  %v57_v23 = vld [vmem:[%s3217_s0 + $0x70] sm:$0xff]  ;;  %v64_v25 = vld [vmem:[%s3217_s0 + $0xa8] sm:$0xff]  ;;  %vm1542_vm10 = vcmask 31744  }
   0x7   :  { %306 = vmatpush1.bf16.msra.mxu1 %v95_v13  ;;  %v97_v22 = vpack.c.bf16 %v55_v20, %v51_v19  ;;  %184 = vmatprep.subr.bf16.mxu0 %v98_v17  ;;  %v99_v26 = vpack.c.bf16 %v57_v23, %v53_v21  ;;  %v102_v27 = vpack.c.bf16 %v64_v25, %v60_v24  ;;  %v62_v28 = vld [vmem:[%s3217_s0 + $0x98] sm:$0xff]  ;;  %v59_v30 = vld [vmem:[%s3217_s0 + $0x80] sm:$0xff]  ;;  %v61_v33 = vld [vmem:[%s3217_s0 + $0x90] sm:$0xff] }
   0x8   :  { %307 = vmatprep.subr.bf16.mxu1 %v100_v18  ;;  %v66_v29 = vld [vmem:[%s3217_s0 + $0xb8] sm:$0xff]  ;;  %v63_v32 = vld [vmem:[%s3217_s0 + $0xa0] sm:$0xff]  ;;  %v65_v34 = vld [vmem:[%s3217_s0 + $0xb0] sm:$0xff] }
   0x9   :  { %v104_v31 = vpack.c.bf16 %v66_v29, %v62_v28  ;;  %v101_v35 = vpack.c.bf16 %v63_v32, %v59_v30  ;;  %v68_v36 = vld [vmem:[%s3217_s0 + $0xc8] sm:$0xff]  ;;  %v70_v38 = vld [vmem:[%s3217_s0 + $0xd8] sm:$0xff]  ;;  %v103_v39 = vpack.c.bf16 %v65_v34, %v61_v33  ;;  %v67_v42 = vld [vmem:[%s3217_s0 + $0xc0] sm:$0xff] }
   0xa   :  { %185 = vmatpush1.bf16.msra.mxu0 %v97_v22  ;;  %v72_v37 = vld [vmem:[%s3217_s0 + $0xe8] sm:$0xff]  ;;  %v74_v41 = vld [vmem:[%s3217_s0 + $0xf8] sm:$0xff]  ;;  %v71_v43 = vld [vmem:[%s3217_s0 + $0xe0] sm:$0xff] }
   0xb   :  { %308 = vmatpush1.bf16.msra.mxu1 %v99_v26  ;;  %186 = vmatprep.subr.bf16.mxu0 %v102_v27  ;;  %v106_v40 = vpack.c.bf16 %v72_v37, %v68_v36  ;;  %v108_v44 = vpack.c.bf16 %v74_v41, %v70_v38  ;;  %v69_v45 = vld [vmem:[%s3217_s0 + $0xd0] sm:$0xff]  ;;  %v105_v47 = vpack.c.bf16 %v71_v43, %v67_v42  ;;  %v2069_v49 = vld [vmem:[%s3218_s2] sm:$0xff]   ;;  %v1069_v50 = vld [vmem:[%s3219_s3 + $0x8] sm:$0xff] }
   0xc   :  { %309 = vmatprep.subr.bf16.mxu1 %v104_v31  ;;  %v73_v46 = vld [vmem:[%s3217_s0 + $0xf0] sm:$0xff]  ;;  %v1068_v51 = vld [vmem:[%s3219_s3] sm:$0xff]  ;;  %1077 = vperm.xlu1 %2068, %v1069_v50   ;;  %v2070_v52 = vld [vmem:[%s3218_s2 + $0x8] sm:$0xff]   ;;  %s2106_s0 = smov 111  }
   0xd   :  { %v107_v48 = vpack.c.bf16 %v73_v46, %v69_v45  ;;  %1072 = vperm.xlu0 %2067, %v1068_v51   ;;  %v2071_v53 = vld [vmem:[%s3218_s2 + $0x10] sm:$0xff]   ;;  %v2072_v54 = vld [vmem:[%s3218_s2 + $0x18] sm:$0xff]   ;;  %v2073_v55 = vld [vmem:[%s3218_s2 + $0x20] sm:$0xff]  }
   0xe   :  { %187 = vmatpush1.bf16.msra.mxu0 %v101_v35  ;;  %v2074_v56 = vld [vmem:[%s3218_s2 + $0x28] sm:$0xff]   ;;  %v2075_v57 = vld [vmem:[%s3218_s2 + $0x30] sm:$0xff]   ;;  %v2076_v58 = vld [vmem:[%s3218_s2 + $0x38] sm:$0xff]  }
   0xf   :  { %310 = vmatpush1.bf16.msra.mxu1 %v103_v39  ;;  %188 = vmatprep.subr.bf16.mxu0 %v106_v40  ;;  %v2077_v59 = vld [vmem:[%s3218_s2 + $0x40] sm:$0xff]   ;;  %s2100_s2 = smov 16  }
  0x10   :  { %311 = vmatprep.subr.bf16.mxu1 %v108_v44 }
  0x12   :  { %189 = vmatpush1.bf16.msra.mxu0 %v105_v47 }
  0x13   :  { %312 = vmatpush1.bf16.msra.mxu1 %v107_v48 }
  0x15   :  { %2021 = vmatmul.mubr.msk.bf16.vlgmr.msra.gmra.mrb[0].mxu0 %vm154_vm0, %v2069_v49 }
  0x16   :  { %2030 = vmatmul.mubr.msk.bf16.vlgmr.msra.gmra.mrb[0].mxu1 %vm154_vm0, %v2069_v49  ;;  %224 = vmatprep.mubr.bf16.mxu0 %v3227_v3 }
  0x17   :  { %347 = vmatprep.mubr.bf16.mxu1 %v3227_v3 }
  0x1d   :  { %2022 = vmatmul.mubr.msk.bf16.gmra.mrb[4].mxu0 %vm154_vm0, %v2070_v52 }
  0x1e   :  { %2031 = vmatmul.mubr.msk.bf16.gmra.mrb[4].mxu1 %vm154_vm0, %v2070_v52  ;;  %234 = vmatprep.mubr.bf16.mxu0 %v3227_v3 }
  0x1f   :  { %357 = vmatprep.mubr.bf16.mxu1 %v3227_v3 }
  0x25   :  { %2023 = vmatmul.mubr.msk.bf16.gmra.mrb[8].mxu0 %vm154_vm0, %v2071_v53 }
  0x26   :  { %2032 = vmatmul.mubr.msk.bf16.gmra.mrb[8].mxu1 %vm154_vm0, %v2071_v53  ;;  %244 = vmatprep.mubr.bf16.mxu0 %v3227_v3 }
  0x27   :  { %367 = vmatprep.mubr.bf16.mxu1 %v3227_v3 }
  0x2d   :  { %2024 = vmatmul.mubr.msk.bf16.gmra.mrb[12].mxu0 %vm154_vm0, %v2072_v54 }
  0x2e   :  { %2033 = vmatmul.mubr.msk.bf16.gmra.mrb[12].mxu1 %vm154_vm0, %v2072_v54  ;;  %254 = vmatprep.mubr.bf16.mxu0 %v3227_v3 }
  0x2f   :  { %377 = vmatprep.mubr.bf16.mxu1 %v3227_v3 }
  0x35   :  { %2025 = vmatmul.mubr.msk.bf16.gmra.mrb[16].mxu0 %vm154_vm0, %v2073_v55 }
  0x36   :  { %2034 = vmatmul.mubr.msk.bf16.gmra.mrb[16].mxu1 %vm154_vm0, %v2073_v55  ;;  %264 = vmatprep.mubr.bf16.mxu0 %v3227_v3 }
  0x37   :  { %387 = vmatprep.mubr.bf16.mxu1 %v3227_v3 }
  0x3d   :  { %2026 = vmatmul.mubr.msk.bf16.gmra.mrb[20].mxu0 %vm154_vm0, %v2074_v56 }
  0x3e   :  { %2035 = vmatmul.mubr.msk.bf16.gmra.mrb[20].mxu1 %vm154_vm0, %v2074_v56  ;;  %274 = vmatprep.mubr.bf16.mxu0 %v3227_v3 }
  0x3f   :  { %397 = vmatprep.mubr.bf16.mxu1 %v3227_v3 }
  0x45   :  { %2027 = vmatmul.mubr.msk.bf16.gmra.mrb[24].mxu0 %vm154_vm0, %v2075_v57 }
  0x46   :  { %2036 = vmatmul.mubr.msk.bf16.gmra.mrb[24].mxu1 %vm154_vm0, %v2075_v57  ;;  %284 = vmatprep.mubr.bf16.mxu0 %v3227_v3 }
  0x47   :  { %407 = vmatprep.mubr.bf16.mxu1 %v3227_v3 }
  0x4d   :  { %2028 = vmatmul.mubr.msk.bf16.gmra.mrb[28].mxu0 %vm154_vm0, %v2076_v58 }
  0x4e   :  { %2037 = vmatmul.mubr.msk.bf16.gmra.mrb[28].mxu1 %vm154_vm0, %v2076_v58  ;;  %294 = vmatprep.mubr.bf16.mxu0 %v3227_v3 }
  0x4f   :  { %417 = vmatprep.mubr.bf16.mxu1 %v3227_v3 }
  0x55   :  { %2029 = vmatmul.mubr.msk.bf16.gmra.mrb[32].mxu0 %vm154_vm0, %v2077_v59 }
  0x56   :  { %2038 = vmatmul.mubr.msk.bf16.gmra.mrb[32].mxu1 %vm154_vm0, %v2077_v59  ;;  %1159 = vmatprep.mubr.bf16.mxu0 %v3227_v3 }
  0x57   :  { %1220 = vmatprep.mubr.bf16.mxu1 %v3227_v3 }
  0xe8   :  { %v216_v60 = vpop.f32.mrb[0].mxu0 }
  0xe9   :  { %v339_v61 = vpop.f32.mrb[0].mxu1  ;;  %442 = vrot.lane.b32.xlu1 %v216_v60, %s2099_s23  ;;  %v218_v62 = vpop.f32.mrb[1].mxu0 }
  0xea   :  { %446 = vrot.lane.b32.xlu0 %v339_v61, %s2099_s23  ;;  %v341_v63 = vpop.f32.mrb[1].mxu1  ;;  %v220_v0 = vpop.f32.mrb[2].mxu0 }
  0xeb   :  { %v343_v1 = vpop.f32.mrb[2].mxu1  ;;  %v222_v2 = vpop.f32.mrb[3].mxu0 }
  0xec   :  { %v345_v4 = vpop.f32.mrb[3].mxu1 }
  0xed   :  { %444 = vrot.lane.b32.xlu1 %v218_v62, %s2099_s23 }
  0xee   :  { %430 = vrot.lane.b32.xlu0 %v341_v63, %s2099_s23 }
  0xf0   :  { %v226_v5 = vpop.f32.mrb[4].mxu0 }
  0xf1   :  { %448 = vrot.lane.b32.xlu1 %v220_v0, %s2099_s23  ;;  %v228_v6 = vpop.f32.mrb[5].mxu0  ;;  %v349_v7 = vpop.f32.mrb[4].mxu1 }
  0xf2   :  { %432 = vrot.lane.b32.xlu0 %v345_v4, %s2099_s23  ;;  %v230_v8 = vpop.f32.mrb[6].mxu0  ;;  %v351_v9 = vpop.f32.mrb[5].mxu1 }
  0xf3   :  { %v232_v10 = vpop.f32.mrb[7].mxu0  ;;  %v353_v11 = vpop.f32.mrb[6].mxu1 }
  0xf4   :  { %v355_v12 = vpop.f32.mrb[7].mxu1 }
  0xf5   :  { %452 = vrot.lane.b32.xlu1 %v343_v1, %s2099_s23 }
  0xf6   :  { %450 = vrot.lane.b32.xlu0 %v222_v2, %s2099_s23 }
  0xf8   :  { %v236_v13 = vpop.f32.mrb[8].mxu0 }
  0xf9   :  { %516 = vrot.lane.b32.xlu1 %v228_v6, %s2100_s2  ;;  %v238_v14 = vpop.f32.mrb[9].mxu0  ;;  %v359_v15 = vpop.f32.mrb[8].mxu1 }
  0xfa   :  { %514 = vrot.lane.b32.xlu0 %v226_v5, %s2100_s2  ;;  %v240_v16 = vpop.f32.mrb[10].mxu0  ;;  %v361_v17 = vpop.f32.mrb[9].mxu1 }
  0xfb   :  { %v242_v18 = vpop.f32.mrb[11].mxu0  ;;  %v363_v19 = vpop.f32.mrb[10].mxu1 }
  0xfc   :  { %v365_v20 = vpop.f32.mrb[11].mxu1  ;;  %v2393_v6 = vpop.permute.xlu1 %1077 }
  0xfd   :  { %520 = vrot.lane.b32.xlu1 %v230_v8, %s2100_s2  ;;  %3288 = vst [vmem:[#allocation11_spill] sm:$0xff] %v2393_v6 }
  0xfe   :  { %518 = vrot.lane.b32.xlu0 %v349_v7, %s2100_s2  ;;  %v2396_v7 = vpop.permute.xlu0 %1072 }
  0xff   :  { %3289 = vst [vmem:[#allocation12_spill] sm:$0xff] %v2396_v7 }
 0x100   :  { %v246_v21 = vpop.f32.mrb[12].mxu0 }
 0x101   :  { %524 = vrot.lane.b32.xlu1 %v353_v11, %s2100_s2  ;;  %v248_v22 = vpop.f32.mrb[13].mxu0  ;;  %v369_v23 = vpop.f32.mrb[12].mxu1 }
 0x102   :  { %502 = vrot.lane.b32.xlu0 %v351_v9, %s2100_s2  ;;  %v250_v24 = vpop.f32.mrb[14].mxu0  ;;  %v371_v25 = vpop.f32.mrb[13].mxu1 }
 0x103   :  { %v252_v26 = vpop.f32.mrb[15].mxu0  ;;  %v373_v27 = vpop.f32.mrb[14].mxu1 }
 0x104   :  { %v375_v28 = vpop.f32.mrb[15].mxu1 }
 0x105   :  { %504 = vrot.lane.b32.xlu1 %v355_v12, %s2100_s2 }
 0x106   :  { %522 = vrot.lane.b32.xlu0 %v232_v10, %s2100_s2 }
 0x108   :  { %v2338_v29 = vpop.f32.mrb[16].mxu0 }
 0x109   :  { %3280 = vst [vmem:[#allocation3_spill] sm:$0xff] %v2338_v29  ;;  %596 = vrot.lane.b32.xlu1 %v238_v14, %s2101_s24  ;;  %v2341_v30 = vpop.f32.mrb[17].mxu0  ;;  %v2343_v31 = vpop.f32.mrb[16].mxu1  ;;  %v1517_v14 = vld [vmem:[%s3220_s5] sm:$0xf] }
 0x10a   :  { %3281 = vst [vmem:[#allocation4_spill] sm:$0xff] %v2341_v30  ;;  %3282 = vst [vmem:[#allocation5_spill] sm:$0xff] %v2343_v31  ;;  %594 = vrot.lane.b32.xlu0 %v236_v13, %s2101_s24  ;;  %v2346_v32 = vpop.f32.mrb[18].mxu0  ;;  %v2348_v33 = vpop.f32.mrb[17].mxu1 }
 0x10b   :  { %3283 = vst [vmem:[#allocation6_spill] sm:$0xff] %v2346_v32  ;;  %3284 = vst [vmem:[#allocation7_spill] sm:$0xff] %v2348_v33  ;;  %v2350_v34 = vpop.f32.mrb[19].mxu0  ;;  %v2352_v35 = vpop.f32.mrb[18].mxu1 }
 0x10c   :  { %3285 = vst [vmem:[#allocation8_spill] sm:$0xff] %v2350_v34  ;;  %3286 = vst [vmem:[#allocation9_spill] sm:$0xff] %v2352_v35  ;;  %v2354_v36 = vpop.f32.mrb[19].mxu1 }
 0x10d   :  { %3287 = vst [vmem:[#allocation10_spill] sm:$0xff] %v2354_v36  ;;  %600 = vrot.lane.b32.xlu1 %v240_v16, %s2101_s24 }
 0x10e   :  { %598 = vrot.lane.b32.xlu0 %v359_v15, %s2101_s24 }
 0x110   :  { %v266_v37 = vpop.f32.mrb[20].mxu0 }
 0x111   :  { %604 = vrot.lane.b32.xlu1 %v363_v19, %s2101_s24  ;;  %v268_v38 = vpop.f32.mrb[21].mxu0  ;;  %v389_v39 = vpop.f32.mrb[20].mxu1 }
 0x112   :  { %582 = vrot.lane.b32.xlu0 %v361_v17, %s2101_s24  ;;  %v270_v40 = vpop.f32.mrb[22].mxu0  ;;  %v391_v41 = vpop.f32.mrb[21].mxu1 }
 0x113   :  { %v272_v42 = vpop.f32.mrb[23].mxu0  ;;  %v393_v43 = vpop.f32.mrb[22].mxu1 }
 0x114   :  { %v395_v44 = vpop.f32.mrb[23].mxu1 }
 0x115   :  { %584 = vrot.lane.b32.xlu1 %v365_v20, %s2101_s24 }
 0x116   :  { %602 = vrot.lane.b32.xlu0 %v242_v18, %s2101_s24 }
 0x118   :  { %v276_v45 = vpop.f32.mrb[24].mxu0 }
 0x119   :  { %676 = vrot.lane.b32.xlu1 %v248_v22, %s2102_s25  ;;  %v278_v46 = vpop.f32.mrb[25].mxu0  ;;  %v399_v47 = vpop.f32.mrb[24].mxu1 }
 0x11a   :  { %674 = vrot.lane.b32.xlu0 %v246_v21, %s2102_s25  ;;  %v280_v48 = vpop.f32.mrb[26].mxu0  ;;  %v401_v49 = vpop.f32.mrb[25].mxu1 }
 0x11b   :  { %v282_v50 = vpop.f32.mrb[27].mxu0  ;;  %v403_v51 = vpop.f32.mrb[26].mxu1 }
 0x11c   :  { %v405_v52 = vpop.f32.mrb[27].mxu1 }
 0x11d   :  { %680 = vrot.lane.b32.xlu1 %v250_v24, %s2102_s25 }
 0x11e   :  { %678 = vrot.lane.b32.xlu0 %v369_v23, %s2102_s25 }
 0x120   :  { %v286_v53 = vpop.f32.mrb[28].mxu0 }
 0x121   :  { %684 = vrot.lane.b32.xlu1 %v373_v27, %s2102_s25  ;;  %v288_v54 = vpop.f32.mrb[29].mxu0  ;;  %v409_v55 = vpop.f32.mrb[28].mxu1 }
 0x122   :  { %662 = vrot.lane.b32.xlu0 %v371_v25, %s2102_s25  ;;  %v290_v56 = vpop.f32.mrb[30].mxu0  ;;  %v411_v57 = vpop.f32.mrb[29].mxu1 }
 0x123   :  { %v292_v58 = vpop.f32.mrb[31].mxu0  ;;  %v413_v59 = vpop.f32.mrb[30].mxu1 }
 0x124   :  { %v415_v60 = vpop.f32.mrb[31].mxu1 }
 0x125   :  { %664 = vrot.lane.b32.xlu1 %v375_v28, %s2102_s25 }
 0x126   :  { %682 = vrot.lane.b32.xlu0 %v252_v26, %s2102_s25 }
 0x128   :  { %v296_v61 = vpop.f32.mrb[32].mxu0 }
 0x129   :  { %758 = vrot.lane.b32.xlu1 %v268_v38, %s2103_s26  ;;  %v298_v62 = vpop.f32.mrb[33].mxu0  ;;  %v419_v63 = vpop.f32.mrb[32].mxu1 }
 0x12a   :  { %756 = vrot.lane.b32.xlu0 %v266_v37, %s2103_s26  ;;  %v300_v0 = vpop.f32.mrb[34].mxu0  ;;  %v421_v1 = vpop.f32.mrb[33].mxu1 }
 0x12b   :  { %v302_v2 = vpop.f32.mrb[35].mxu0  ;;  %v423_v4 = vpop.f32.mrb[34].mxu1 }
 0x12c   :  { %v425_v5 = vpop.f32.mrb[35].mxu1 }
 0x12d   :  { %762 = vrot.lane.b32.xlu1 %v391_v41, %s2103_s26 }
 0x12e   :  { %760 = vrot.lane.b32.xlu0 %v389_v39, %s2103_s26 }
 0x131   :  { %766 = vrot.lane.b32.xlu1 %v272_v42, %s2103_s26 }
 0x132   :  { %764 = vrot.lane.b32.xlu0 %v270_v40, %s2103_s26 }
 0x135   :  { %770 = vrot.lane.b32.xlu1 %v395_v44, %s2103_s26 }
 0x136   :  { %768 = vrot.lane.b32.xlu0 %v393_v43, %s2103_s26 }
 0x139   :  { %838 = vrot.lane.b32.xlu1 %v278_v46, %s2104_s27 }
 0x13a   :  { %836 = vrot.lane.b32.xlu0 %v276_v45, %s2104_s27 }
 0x13d   :  { %842 = vrot.lane.b32.xlu1 %v401_v49, %s2104_s27 }
 0x13e   :  { %840 = vrot.lane.b32.xlu0 %v399_v47, %s2104_s27  ;;  %v3226_v47 = vlaneseq }
 0x141   :  { %846 = vrot.lane.b32.xlu1 %v282_v50, %s2104_s27  ;;  %v2474_v50 = vshrl.u32 %v3226_v47, 7 }
 0x142   :  { %844 = vrot.lane.b32.xlu0 %v280_v48, %s2104_s27 }
 0x143   :  { %3290 = vst [vmem:[#allocation13_spill] sm:$0xff] %v2474_v50 }
 0x145   :  { %850 = vrot.lane.b32.xlu1 %v405_v52, %s2104_s27  ;;  %v2010_v52 = vld [vmem:[%s3222_s1 + $0x2] ss:$4 sm:$0xf] }
 0x146   :  { %848 = vrot.lane.b32.xlu0 %v403_v51, %s2104_s27  ;;  %v32_v51 = vld [vmem:[%s3222_s1] ss:$4 sm:$0xf] }
 0x149   :  { %918 = vrot.lane.b32.xlu1 %v288_v54, %s2105_s28 }
 0x14a   :  { %916 = vrot.lane.b32.xlu0 %v286_v53, %s2105_s28 }
 0x14d   :  { %922 = vrot.lane.b32.xlu1 %v411_v57, %s2105_s28  ;;  %v2490_v57 = vsub.s32 3, %v2474_v50 }
 0x14e   :  { %920 = vrot.lane.b32.xlu0 %v409_v55, %s2105_s28  ;;  %v39_v55 = vmul.f32 %v2010_v52, %v32_v51 }
 0x14f   :  { %v2532_v6 = vrot.slane %v32_v51, %v2490_v57 }
 0x151   :  { %926 = vrot.lane.b32.xlu1 %v292_v58, %s2105_s28  ;;  %v2011_v58 = vld [vmem:[%s3222_s1 + $0x3] ss:$4 sm:$0xf] }
 0x152   :  { %924 = vrot.lane.b32.xlu0 %v290_v56, %s2105_s28  ;;  %v2487_v56 = vsub.s32 0, %v2474_v50 }
 0x154   :  { %3293 = vst [vmem:[#allocation16_spill] sm:$0xff] %v2487_v56  ;;  %v2563_v33 = vrot.slane %v2011_v58, %v2487_v56 }
 0x155   :  { %930 = vrot.lane.b32.xlu1 %v415_v60, %s2105_s28  ;;  %v2499_v60 = vsub.s32 2, %v2474_v50 }
 0x156   :  { %928 = vrot.lane.b32.xlu0 %v413_v59, %s2105_s28  ;;  %v2496_v59 = vsub.s32 1, %v2474_v50  ;;  %v2529_v50 = vrot.slane %v32_v51, %v2487_v56  ;;  %3310 = vst [vmem:[#allocation33_spill] sm:$0xff] %v2563_v33 }
 0x157   :  { %v2526_v3 = vrot.slane %v32_v51, %v2499_v60  ;;  %v2569_v31 = vrot.slane %v2011_v58, %v2499_v60 }
 0x158   :  { %v2549_v32 = vrot.slane %v2010_v52, %v2496_v59 }
 0x159   :  { %996 = vrot.lane.b32.xlu1 %v296_v61, %s2106_s0  ;;  %3301 = vst [vmem:[#allocation24_spill] sm:$0xff] %v2526_v3  ;;  %3312 = vst [vmem:[#allocation35_spill] sm:$0xff] %v2569_v31 }
 0x15a   :  { %998 = vrot.lane.b32.xlu0 %v298_v62, %s2106_s0  ;;  %3306 = vst [vmem:[#allocation29_spill] sm:$0xff] %v2549_v32 }
 0x15b   :  { %v2400_v8 = vpop.permute.xlu1 %442 }
 0x15c   :  { %v2402_v9 = vpop.permute.xlu0 %446 }
 0x15d   :  { %1000 = vrot.lane.b32.xlu1 %v419_v63, %s2106_s0  ;;  %v40_v63 = vmul.f32 %v2011_v58, %v32_v51 }
 0x15e   :  { %1002 = vrot.lane.b32.xlu0 %v421_v1, %s2106_s0  ;;  %v2509_v1 = vrot.slane %v39_v55, %v2487_v56 }
 0x15f   :  { %v2406_v10 = vpop.permute.xlu1 %444  ;;  %v2540_v34 = vrot.slane %v40_v63, %v2499_v60  ;;  %v2543_v36 = vrot.slane %v40_v63, %v2487_v56 }
 0x160   :  { %v2408_v11 = vpop.permute.xlu0 %430  ;;  %3296 = vst [vmem:[#allocation19_spill] sm:$0xff] %v2509_v1  ;;  %v455_v31 = vsel %vm454_vm1, %v2400_v8, %v2406_v10 }
 0x161   :  { %1004 = vrot.lane.b32.xlu1 %v300_v0, %s2106_s0  ;;  %v2009_v0 = vld [vmem:[%s3222_s1 + $0x1] ss:$4 sm:$0xf]  ;;  %3304 = vst [vmem:[#allocation27_spill] sm:$0xff] %v2540_v34 }
 0x162   :  { %1006 = vrot.lane.b32.xlu0 %v302_v2, %s2106_s0  ;;  %v2512_v2 = vrot.slane %v39_v55, %v2490_v57  ;;  %v41_v35 = vmul.f32 %v2010_v52, %v2009_v0 }
 0x163   :  { %v2412_v12 = vpop.permute.xlu1 %448 }
 0x164   :  { %v2414_v13 = vpop.permute.xlu0 %432  ;;  %3297 = vst [vmem:[#allocation20_spill] sm:$0xff] %v2512_v2  ;;  %v2579_v30 = vrot.slane %v41_v35, %v2487_v56  ;;  %v2585_v33 = vrot.slane %v41_v35, %v2499_v60 }
 0x165   :  { %1008 = vrot.lane.b32.xlu1 %v423_v4, %s2106_s0  ;;  %v2515_v4 = vrot.slane %v39_v55, %v2496_v59 }
 0x166   :  { %1010 = vrot.lane.b32.xlu0 %v425_v5, %s2106_s0  ;;  %v2518_v5 = vrot.slane %v39_v55, %v2499_v60  ;;  %v2537_v55 = vrot.slane %v40_v63, %v2496_v59  ;;  %3315 = vst [vmem:[#allocation38_spill] sm:$0xff] %v2579_v30  ;;  %3317 = vst [vmem:[#allocation40_spill] sm:$0xff] %v2585_v33  ;;  %v2603_v33 = vrot.slane %v2009_v0, %v2499_v60 }
 0x167   :  { %v2421_v15 = vpop.permute.xlu1 %452  ;;  %3298 = vst [vmem:[#allocation21_spill] sm:$0xff] %v2515_v4  ;;  %v2606_v30 = vrot.slane %v2009_v0, %v2490_v57 }
 0x168   :  { %v2423_v16 = vpop.permute.xlu0 %450  ;;  %3299 = vst [vmem:[#allocation22_spill] sm:$0xff] %v2518_v5  ;;  %3303 = vst [vmem:[#allocation26_spill] sm:$0xff] %v2537_v55 }
 0x169   :  { %1520 = vperm.xlu1 %2068, %v1517_v14   ;;  %v2521_v14 = vrot.slane %v32_v51, %v2496_v59  ;;  %v2552_v51 = vrot.slane %v2010_v52, %v2499_v60  ;;  %3321 = vst [vmem:[#allocation44_spill] sm:$0xff] %v2603_v33  ;;  %3322 = vst [vmem:[#allocation45_spill] sm:$0xff] %v2606_v30 }
 0x16b   :  { %v2425_v17 = vpop.permute.xlu1 %516  ;;  %3307 = vst [vmem:[#allocation30_spill] sm:$0xff] %v2552_v51 }
 0x16c   :  { %v2427_v18 = vpop.permute.xlu0 %514 }
 0x16f   :  { %v2429_v19 = vpop.permute.xlu1 %520 }
 0x170   :  { %v2431_v20 = vpop.permute.xlu0 %518 }
 0x173   :  { %v2433_v21 = vpop.permute.xlu1 %524 }
 0x174   :  { %v2435_v22 = vpop.permute.xlu0 %502 }
 0x177   :  { %v2437_v23 = vpop.permute.xlu1 %504 }
 0x178   :  { %v2439_v24 = vpop.permute.xlu0 %522 }
 0x17b   :  { %v2441_v25 = vpop.permute.xlu1 %596 }
 0x17c   :  { %v2443_v26 = vpop.permute.xlu0 %594 }
 0x17f   :  { %v2445_v27 = vpop.permute.xlu1 %600 }
 0x180   :  { %v2447_v28 = vpop.permute.xlu0 %598 }
 0x183   :  { %v2449_v37 = vpop.permute.xlu1 %604 }
 0x184   :  { %v2451_v38 = vpop.permute.xlu0 %582 }
 0x187   :  { %v2453_v39 = vpop.permute.xlu1 %584 }
 0x188   :  { %v2455_v40 = vpop.permute.xlu0 %602 }
 0x18b   :  { %v2457_v41 = vpop.permute.xlu1 %676 }
 0x18c   :  { %v2459_v42 = vpop.permute.xlu0 %674 }
 0x18f   :  { %v2461_v43 = vpop.permute.xlu1 %680 }
 0x190   :  { %v2463_v44 = vpop.permute.xlu0 %678 }
 0x193   :  { %v2465_v45 = vpop.permute.xlu1 %684 }
 0x194   :  { %v2467_v46 = vpop.permute.xlu0 %662 }
 0x197   :  { %v2469_v48 = vpop.permute.xlu1 %664 }
 0x198   :  { %v2471_v49 = vpop.permute.xlu0 %682 }
 0x19b   :  { %v2482_v53 = vpop.permute.xlu1 %758 }
 0x19c   :  { %3291 = vst [vmem:[#allocation14_spill] sm:$0xff] %v2482_v53  ;;  %v2484_v54 = vpop.permute.xlu0 %756  ;;  %v2574_v53 = vrot.slane %v2011_v58, %v2490_v57 }
 0x19d   :  { %3292 = vst [vmem:[#allocation15_spill] sm:$0xff] %v2484_v54 }
 0x19e   :  { %3313 = vst [vmem:[#allocation36_spill] sm:$0xff] %v2574_v53  ;;  %v2594_v53 = vrot.slane %v41_v35, %v2490_v57 }
 0x19f   :  { %v2501_v61 = vpop.permute.xlu1 %762 }
 0x1a0   :  { %3294 = vst [vmem:[#allocation17_spill] sm:$0xff] %v2501_v61  ;;  %v2503_v62 = vpop.permute.xlu0 %760  ;;  %v2557_v61 = vmul.f32 %v2011_v58, %v2009_v0  ;;  %3318 = vst [vmem:[#allocation41_spill] sm:$0xff] %v2594_v53 }
 0x1a1   :  { %3295 = vst [vmem:[#allocation18_spill] sm:$0xff] %v2503_v62  ;;  %v2560_v62 = vrot.slane %v2010_v52, %v2490_v57 }
 0x1a3   :  { %v2523_v47 = vpop.permute.xlu1 %766  ;;  %3309 = vst [vmem:[#allocation32_spill] sm:$0xff] %v2560_v62 }
 0x1a4   :  { %3300 = vst [vmem:[#allocation23_spill] sm:$0xff] %v2523_v47  ;;  %v2534_v7 = vpop.permute.xlu0 %764  ;;  %v2546_v47 = vrot.slane %v40_v63, %v2490_v57  ;;  %v2566_v63 = vrot.slane %v2011_v58, %v2496_v59  ;;  %v456_v58 = vsel %vm454_vm1, %v2406_v10, %v2402_v9  ;;  %v469_v10 = vsel %vm454_vm1, %v2408_v11, %v2400_v8 }
 0x1a5   :  { %3302 = vst [vmem:[#allocation25_spill] sm:$0xff] %v2534_v7  ;;  %v2555_v7 = vrot.slane %v2010_v52, %v2487_v56  ;;  %v2582_v52 = vrot.slane %v41_v35, %v2496_v59  ;;  %v457_v35 = vsel %vm454_vm1, %v2402_v9, %v2408_v11  ;;  %v494_v33 = vmul.f32 %v2518_v5, %v456_v58 }
 0x1a6   :  { %3305 = vst [vmem:[#allocation28_spill] sm:$0xff] %v2546_v47  ;;  %3311 = vst [vmem:[#allocation34_spill] sm:$0xff] %v2566_v63  ;;  %v2597_v63 = vrot.slane %v2009_v0, %v2487_v56  ;;  %v529_v9 = vsel %vm526_vm2, %v2431_v20, %v2435_v22  ;;  %v541_v8 = vsel %vm526_vm2, %v2435_v22, %v2427_v18 }
 0x1a7   :  { %3308 = vst [vmem:[#allocation31_spill] sm:$0xff] %v2555_v7  ;;  %v2571_v54 = vpop.permute.xlu1 %770  ;;  %3316 = vst [vmem:[#allocation39_spill] sm:$0xff] %v2582_v52  ;;  %v2600_v52 = vrot.slane %v2009_v0, %v2496_v59  ;;  %v528_v0 = vsel %vm526_vm2, %v2425_v17, %v2431_v20  ;;  %v458_v58 = vsel %vm454_vm1, %v2412_v12, %v2423_v16 }
 0x1a8   :  { %v2576_v29 = vpop.permute.xlu0 %768  ;;  %3319 = vst [vmem:[#allocation42_spill] sm:$0xff] %v2597_v63  ;;  %v542_v20 = vsel %vm526_vm2, %v2437_v23, %v2429_v19  ;;  %v492_v63 = vmul.f32 %v2509_v1, %v469_v10  ;;  %v564_v53 = vmul.f32 %v2529_v50, %v541_v8  ;;  %v531_v8 = vsel %vm526_vm2, %v2439_v24, %v2433_v21 }
 0x1a9   :  { %3314 = vst [vmem:[#allocation37_spill] sm:$0xff] %v2576_v29  ;;  %3320 = vst [vmem:[#allocation43_spill] sm:$0xff] %v2600_v52  ;;  %v2610_v29 = vrot.slane %v2557_v61, %v2487_v56  ;;  %v527_v52 = vsel %vm526_vm2, %v2427_v18, %v2425_v17  ;;  %v493_v56 = vmul.f32 %v2515_v4, %v455_v31 }
 0x1aa   :  { %v470_v17 = vsel %vm454_vm1, %v2414_v13, %v2412_v12  ;;  %v460_v31 = vsel %vm454_vm1, %v2421_v15, %v2414_v13  ;;  %v459_v18 = vsel %vm454_vm1, %v2423_v16, %v2421_v15  ;;  %v565_v22 = vmul.f32 %v2521_v14, %v527_v52 }
 0x1ab   :  { %3323 = vst [vmem:[#allocation46_spill] sm:$0xff] %v2610_v29  ;;  %v2624_v30 = vpop.permute.xlu1 %838  ;;  %v566_v29 = vmul.f32 %v2526_v3, %v528_v0  ;;  %v532_v13 = vsel %vm526_vm2, %v2433_v21, %v2437_v23  ;;  %v495_v12 = vmul.f32 %v2512_v2, %v457_v35  ;;  %v496_v15 = vmul.f32 %v2509_v1, %v470_v17 }
 0x1ac   :  { %3324 = vst [vmem:[#allocation47_spill] sm:$0xff] %v2624_v30  ;;  %v2634_v11 = vpop.permute.xlu0 %836  ;;  %v499_v16 = vmul.f32 %v2512_v2, %v460_v31  ;;  %v568_v52 = vmul.f32 %v2529_v50, %v542_v20  ;;  %v530_v23 = vsel %vm526_vm2, %v2429_v19, %v2439_v24  ;;  %v497_v35 = vmul.f32 %v2515_v4, %v458_v58 }
 0x1ad   :  { %3325 = vst [vmem:[#allocation48_spill] sm:$0xff] %v2634_v11  ;;  %v567_v11 = vmul.f32 %v2532_v6, %v529_v9  ;;  %v498_v10 = vmul.f32 %v2518_v5, %v459_v18  ;;  %v571_v9 = vmul.f32 %v2532_v6, %v532_v13  ;;  %v573_v17 = vadd.f32 %v565_v22, %v493_v56 }
 0x1ae   :  { %v574_v31 = vadd.f32 %v566_v29, %v494_v33  ;;  %v607_v20 = vsel %vm606_vm3, %v2443_v26, %v2441_v25  ;;  %v608_v19 = vsel %vm606_vm3, %v2441_v25, %v2447_v28  ;;  %v572_v2 = vadd.f32 %v564_v53, %v492_v63 }
 0x1af   :  { %v2660_v30 = vpop.permute.xlu1 %842  ;;  %v575_v58 = vadd.f32 %v567_v11, %v495_v12  ;;  %v569_v18 = vmul.f32 %v2521_v14, %v530_v23  ;;  %v621_v13 = vsel %vm606_vm3, %v2451_v38, %v2443_v26  ;;  %v576_v21 = vadd.f32 %v568_v52, %v496_v15 }
 0x1b0   :  { %v2668_v0 = vpop.permute.xlu0 %840  ;;  %v570_v29 = vmul.f32 %v2526_v3, %v531_v8  ;;  %v609_v33 = vsel %vm606_vm3, %v2447_v28, %v2451_v38  ;;  %v622_v24 = vsel %vm606_vm3, %v2453_v39, %v2445_v27  ;;  %v579_v53 = vadd.f32 %v571_v9, %v499_v16 }
 0x1b1   :  { %v645_v56 = vmul.f32 %v2537_v55, %v607_v20  ;;  %v646_v26 = vmul.f32 %v2540_v34, %v608_v19  ;;  %v687_v63 = vsel %vm686_vm4, %v2459_v42, %v2457_v41  ;;  %v644_v11 = vmul.f32 %v2543_v36, %v621_v13 }
 0x1b2   :  { %v688_v28 = vsel %vm686_vm4, %v2457_v41, %v2463_v44  ;;  %v689_v38 = vsel %vm686_vm4, %v2463_v44, %v2467_v46  ;;  %v701_v22 = vsel %vm686_vm4, %v2467_v46, %v2459_v42  ;;  %v577_v12 = vadd.f32 %v569_v18, %v497_v35 }
 0x1b3   :  { %v2686_v5 = vpop.permute.xlu1 %846  ;;  %v647_v15 = vmul.f32 %v2546_v47, %v609_v33  ;;  %v612_v16 = vsel %vm606_vm3, %v2449_v37, %v2453_v39  ;;  %v648_v52 = vmul.f32 %v2543_v36, %v622_v24  ;;  %v610_v41 = vsel %vm606_vm3, %v2445_v27, %v2455_v40 }
 0x1b4   :  { %v2695_v25 = vpop.permute.xlu0 %844  ;;  %v611_v42 = vsel %vm606_vm3, %v2455_v40, %v2449_v37  ;;  %v725_v44 = vmul.f32 %v2549_v32, %v687_v63  ;;  %v702_v46 = vsel %vm686_vm4, %v2469_v48, %v2461_v43  ;;  %v726_v39 = vmul.f32 %v2552_v51, %v688_v28 }
 0x1b5   :  { %v724_v9 = vmul.f32 %v2555_v7, %v701_v22  ;;  %v727_v8 = vmul.f32 %v2560_v62, %v689_v38  ;;  %v692_v27 = vsel %vm686_vm4, %v2465_v45, %v2469_v48  ;;  %v653_v20 = vadd.f32 %v645_v56, %v573_v17 }
 0x1b6   :  { %v654_v37 = vadd.f32 %v646_v26, %v574_v31  ;;  %v652_v40 = vadd.f32 %v644_v11, %v572_v2  ;;  %v651_v19 = vmul.f32 %v2546_v47, %v612_v16  ;;  %v655_v18 = vadd.f32 %v647_v15, %v575_v58 }
 0x1b7   :  { %v2717_v23 = vpop.permute.xlu1 %850  ;;  %v728_v13 = vmul.f32 %v2555_v7, %v702_v46  ;;  %v690_v33 = vsel %vm686_vm4, %v2461_v43, %v2471_v49  ;;  %v691_v24 = vsel %vm686_vm4, %v2471_v49, %v2465_v45  ;;  %v649_v48 = vmul.f32 %v2537_v55, %v610_v41  ;;  %v3329_v41 = vld [vmem:[#allocation4_spill] sm:$0xff]  ;;  %v3330_v46 = vld [vmem:[#allocation3_spill] sm:$0xff] }
 0x1b8   :  { %v2729_v35 = vpop.permute.xlu0 %848  ;;  %v650_v2 = vmul.f32 %v2540_v34, %v611_v42  ;;  %v733_v17 = vadd.f32 %v725_v44, %v653_v20  ;;  %v731_v31 = vmul.f32 %v2560_v62, %v692_v27  ;;  %v656_v56 = vadd.f32 %v648_v52, %v576_v21  ;;  %v3333_v27 = vld [vmem:[#allocation5_spill] sm:$0xff]  ;;  %v3334_v20 = vld [vmem:[#allocation7_spill] sm:$0xff] }
 0x1b9   :  { %v734_v26 = vadd.f32 %v726_v39, %v654_v37  ;;  %v732_v11 = vadd.f32 %v724_v9, %v652_v40  ;;  %v735_v28 = vadd.f32 %v727_v8, %v655_v18  ;;  %v578_v43 = vadd.f32 %v570_v29, %v498_v10  ;;  %v3331_v9 = vld [vmem:[#allocation14_spill] sm:$0xff] }
 0x1ba   :  { %v659_v38 = vadd.f32 %v651_v19, %v579_v53  ;;  %v729_v22 = vmul.f32 %v2549_v32, %v690_v33  ;;  %v730_v45 = vmul.f32 %v2552_v51, %v691_v24  ;;  %v736_v49 = vadd.f32 %v728_v13, %v656_v56  ;;  %v3336_v19 = vld [vmem:[#allocation17_spill] sm:$0xff]  ;;  %v3337_v33 = vld [vmem:[#allocation6_spill] sm:$0xff]  ;;  %v3353_v51 = vld [vmem:[#allocation40_spill] sm:$0xff] }
 0x1bb   :  { %v2745_v63 = vpop.permute.xlu1 %918  ;;  %v2758_v16 = vrot.slane %v2557_v61, %v2496_v59  ;;  %v2762_v21 = vrot.slane %v2557_v61, %v2499_v60  ;;  %v2766_v10 = vrot.slane %v2557_v61, %v2490_v57  ;;  %v657_v29 = vadd.f32 %v649_v48, %v577_v12  ;;  %v3332_v59 = vld [vmem:[#allocation15_spill] sm:$0xff]  ;;  %v3335_v61 = vld [vmem:[#allocation18_spill] sm:$0xff] }
 0x1bc   :  { %v2750_v58 = vpop.permute.xlu0 %916  ;;  %v658_v53 = vadd.f32 %v650_v2, %v578_v43  ;;  %v739_v52 = vadd.f32 %v731_v31, %v659_v38  ;;  %v741_v42 = vadd.f32 %v733_v17, %v3329_v41  ;;  %v740_v39 = vadd.f32 %v732_v11, %v3330_v46  ;;  %v3338_v48 = vld [vmem:[#allocation23_spill] sm:$0xff]  ;;  %v3339_v2 = vld [vmem:[#allocation25_spill] sm:$0xff]  ;;  %v3342_v38 = vld [vmem:[#allocation10_spill] sm:$0xff] }
 0x1bd   :  { %3326 = vst [vmem:[#allocation49_spill] sm:$0xff] %v2758_v16  ;;  %3327 = vst [vmem:[#allocation50_spill] sm:$0xff] %v2762_v21  ;;  %v773_v8 = vsel %vm772_vm5, %v3332_v59, %v3331_v9  ;;  %v742_v60 = vadd.f32 %v734_v26, %v3333_v27  ;;  %v743_v37 = vadd.f32 %v735_v28, %v3334_v20  ;;  %v3340_v26 = vld [vmem:[#allocation33_spill] sm:$0xff]  ;;  %v3344_v41 = vld [vmem:[#allocation36_spill] sm:$0xff] }
 0x1be   :  { %3328 = vst [vmem:[#allocation51_spill] sm:$0xff] %v2766_v10  ;;  %v737_v40 = vadd.f32 %v729_v22, %v657_v29  ;;  %v738_v57 = vadd.f32 %v730_v45, %v658_v53  ;;  %v774_v12 = vsel %vm772_vm5, %v3331_v9, %v3335_v61  ;;  %v789_v18 = vsel %vm772_vm5, %v3336_v19, %v3332_v59  ;;  %v3341_v28 = vld [vmem:[#allocation37_spill] sm:$0xff]  ;;  %v3343_v29 = vld [vmem:[#allocation34_spill] sm:$0xff]  ;;  %v3345_v9 = vld [vmem:[#allocation47_spill] sm:$0xff] }
 0x1bf   :  { %v2754_v15 = vpop.permute.xlu1 %922  ;;  %v775_v13 = vsel %vm772_vm5, %v3335_v61, %v3336_v19  ;;  %v744_v24 = vadd.f32 %v736_v49, %v3337_v33  ;;  %v776_v17 = vsel %vm772_vm5, %v3339_v2, %v3338_v48  ;;  %v790_v31 = vsel %vm772_vm5, %v2571_v54, %v3339_v2  ;;  %v3346_v59 = vld [vmem:[#allocation48_spill] sm:$0xff]  ;;  %v3347_v20 = vld [vmem:[#allocation35_spill] sm:$0xff] }
 0x1c0   :  { %v2769_v44 = vpop.permute.xlu0 %920  ;;  %v812_v11 = vmul.f32 %v3340_v26, %v773_v8  ;;  %v777_v43 = vsel %vm772_vm5, %v3338_v48, %v3341_v28  ;;  %v747_v22 = vadd.f32 %v739_v52, %v3342_v38  ;;  %v778_v45 = vsel %vm772_vm5, %v3341_v28, %v2571_v54  ;;  %v3348_v2 = vld [vmem:[#allocation8_spill] sm:$0xff]  ;;  %v3350_v38 = vld [vmem:[#allocation38_spill] sm:$0xff] }
 0x1c1   :  { %v813_v53 = vmul.f32 %v3343_v29, %v774_v12  ;;  %v815_v46 = vmul.f32 %v3344_v41, %v789_v18  ;;  %v853_v27 = vsel %vm852_vm6, %v3346_v59, %v3345_v9  ;;  %v869_v8 = vsel %vm852_vm6, %v2660_v30, %v3346_v59 }
 0x1c2   :  { %v814_v61 = vmul.f32 %v3347_v20, %v775_v13  ;;  %v816_v52 = vmul.f32 %v3340_v26, %v776_v17  ;;  %v819_v19 = vmul.f32 %v3344_v41, %v790_v31  ;;  %v854_v54 = vsel %vm852_vm6, %v3345_v9, %v2668_v0  ;;  %v3349_v31 = vld [vmem:[#allocation9_spill] sm:$0xff] }
 0x1c3   :  { %v2793_v56 = vpop.permute.xlu1 %926  ;;  %v817_v12 = vmul.f32 %v3343_v29, %v777_v43  ;;  %v818_v18 = vmul.f32 %v3347_v20, %v778_v45  ;;  %v855_v33 = vsel %vm852_vm6, %v2668_v0, %v2660_v30  ;;  %v856_v13 = vsel %vm852_vm6, %v2695_v25, %v2686_v5  ;;  %v3351_v9 = vld [vmem:[#allocation41_spill] sm:$0xff]  ;;  %v3352_v20 = vld [vmem:[#allocation39_spill] sm:$0xff] }
 0x1c4   :  { %v925_v49 = vpop.permute.xlu0 %924  ;;  %v745_v17 = vadd.f32 %v737_v40, %v3348_v2  ;;  %v746_v28 = vadd.f32 %v738_v57, %v3349_v31  ;;  %v892_v59 = vmul.f32 %v3350_v38, %v853_v27  ;;  %v895_v41 = vmul.f32 %v3351_v9, %v869_v8 }
 0x1c5   :  { %v820_v29 = vadd.f32 %v812_v11, %v740_v39  ;;  %v823_v45 = vadd.f32 %v815_v46, %v743_v37  ;;  %v893_v34 = vmul.f32 %v3352_v20, %v854_v54  ;;  %v933_v30 = vsel %vm932_vm7, %v2750_v58, %v2745_v63  ;;  %v3354_v11 = vld [vmem:[#allocation42_spill] sm:$0xff] }
 0x1c6   :  { %v821_v0 = vadd.f32 %v813_v53, %v741_v42  ;;  %v822_v26 = vadd.f32 %v814_v61, %v742_v60  ;;  %v894_v55 = vmul.f32 %v3353_v51, %v855_v33  ;;  %v896_v40 = vmul.f32 %v3350_v38, %v856_v13  ;;  %v3355_v61 = vld [vmem:[#allocation46_spill] sm:$0xff] }
 0x1c7   :  { %v931_v48 = vpop.permute.xlu1 %930  ;;  %v824_v57 = vadd.f32 %v816_v52, %v744_v24  ;;  %v825_v2 = vadd.f32 %v817_v12, %v745_v17  ;;  %v826_v27 = vadd.f32 %v818_v18, %v746_v28  ;;  %v827_v31 = vadd.f32 %v819_v19, %v747_v22  ;;  %v3357_v18 = vld [vmem:[#allocation44_spill] sm:$0xff]  ;;  %v3358_v28 = vld [vmem:[#allocation45_spill] sm:$0xff] }
 0x1c8   :  { %v929_v43 = vpop.permute.xlu0 %928  ;;  %v900_v47 = vadd.f32 %v892_v59, %v820_v29  ;;  %v903_v39 = vadd.f32 %v895_v41, %v823_v45  ;;  %v870_v37 = vsel %vm852_vm6, %v2717_v23, %v2695_v25  ;;  %v972_v46 = vmul.f32 %v3354_v11, %v933_v30 }
 0x1c9   :  { %v901_v42 = vadd.f32 %v893_v34, %v821_v0  ;;  %v857_v60 = vsel %vm852_vm6, %v2686_v5, %v2729_v35  ;;  %v934_v24 = vsel %vm932_vm7, %v2745_v63, %v2769_v44  ;;  %v902_v29 = vadd.f32 %v894_v55, %v822_v26 }
 0x1ca   :  { %v904_v53 = vadd.f32 %v896_v40, %v824_v57  ;;  %v858_v25 = vsel %vm852_vm6, %v2729_v35, %v2717_v23  ;;  %v935_v34 = vsel %vm932_vm7, %v2769_v44, %v2754_v15  ;;  %v899_v41 = vmul.f32 %v3351_v9, %v870_v37  ;;  %v3356_v23 = vld [vmem:[#allocation43_spill] sm:$0xff] }
 0x1cb   :  { %v997_v8 = vpop.permute.xlu1 %996  ;;  %v949_v5 = vsel %vm932_vm7, %v2754_v15, %v2750_v58  ;;  %v936_v63 = vsel %vm932_vm7, %v925_v49, %v2793_v56  ;;  %v897_v52 = vmul.f32 %v3352_v20, %v857_v60  ;;  %v980_v19 = vadd.f32 %v972_v46, %v900_v47 }
 0x1cc   :  { %v999_v54 = vpop.permute.xlu0 %998  ;;  %v973_v35 = vmul.f32 %v3356_v23, %v934_v24  ;;  %v974_v33 = vmul.f32 %v3357_v18, %v935_v34  ;;  %v950_v13 = vsel %vm932_vm7, %v931_v48, %v925_v49  ;;  %v898_v17 = vmul.f32 %v3353_v51, %v858_v25 }
 0x1cd   :  { %v1013_v22 = vsel %vm1012_vm8, %v997_v8, %v999_v54  ;;  %v975_v59 = vmul.f32 %v3358_v28, %v949_v5  ;;  %v976_v45 = vmul.f32 %v3354_v11, %v936_v63  ;;  %v937_v47 = vsel %vm932_vm7, %v2793_v56, %v929_v43 }
 0x1ce   :  { %v1052_v55 = vmul.f32 %v3355_v61, %v1013_v22  ;;  %v938_v30 = vsel %vm932_vm7, %v929_v43, %v931_v48  ;;  %v905_v37 = vadd.f32 %v897_v52, %v825_v2  ;;  %v907_v46 = vadd.f32 %v899_v41, %v827_v31  ;;  %v3359_v2 = vld [vmem:[#allocation12_spill] sm:$0xff] }
 0x1cf   :  { %v1001_v26 = vpop.permute.xlu1 %1000  ;;  %v981_v24 = vadd.f32 %v973_v35, %v901_v42  ;;  %v982_v22 = vadd.f32 %v974_v33, %v902_v29  ;;  %v977_v25 = vmul.f32 %v3356_v23, %v937_v47  ;;  %v983_v48 = vadd.f32 %v975_v59, %v903_v39 }
 0x1d0   :  { %v1014_v12 = vsel %vm1012_vm8, %v999_v54, %v1001_v26  ;;  %v1003_v44 = vpop.permute.xlu0 %1002  ;;  %v1060_v0 = vadd.f32 %v1052_v55, %v980_v19  ;;  %v984_v43 = vadd.f32 %v976_v45, %v904_v53  ;;  %v978_v34 = vmul.f32 %v3357_v18, %v938_v30 }
 0x1d1   :  { %v1015_v58 = vsel %vm1012_vm8, %v1001_v26, %v1003_v44  ;;  %v1029_v15 = vsel %vm1012_vm8, %v1003_v44, %v997_v8  ;;  %v1053_v40 = vmul.f32 %v2758_v16, %v1014_v12  ;;  %v979_v8 = vmul.f32 %v3358_v28, %v950_v13 }
 0x1d2   :  { %v1054_v49 = vmul.f32 %v2762_v21, %v1015_v58  ;;  %v1055_v54 = vmul.f32 %v2766_v10, %v1029_v15  ;;  %v906_v63 = vadd.f32 %v898_v17, %v826_v27  ;;  %v1080_v31 = vadd.f32 %v3359_v2, %v1060_v0  ;;  %v3360_v27 = vld [vmem:[#allocation11_spill] sm:$0xff] }
 0x1d3   :  { %v1005_v57 = vpop.permute.xlu1 %1004  ;;  %v1061_v41 = vadd.f32 %v1053_v40, %v981_v24  ;;  %v987_v52 = vadd.f32 %v979_v8, %v907_v46  ;;  %v985_v12 = vadd.f32 %v977_v25, %v905_v37 }
 0x1d4   :  { %v1007_v60 = vpop.permute.xlu0 %1006  ;;  %v1062_v55 = vadd.f32 %v1054_v49, %v982_v22  ;;  %v1063_v19 = vadd.f32 %v1055_v54, %v983_v48  ;;  %v986_v33 = vadd.f32 %v978_v34, %v906_v63  ;;  %v1088_v17 = vmax.f32 %v1080_v31, 0.0  ;;  %v2080_v31 = vld [vmem:[%s3221_s4 + $0x10] ss:$0 sps:$4 sm:$0x33]  }
 0x1d5   :  { %v1016_v56 = vsel %vm1012_vm8, %v1005_v57, %v1007_v60  ;;  %v1081_v47 = vadd.f32 %v3359_v2, %v1061_v41  ;;  %v3361_v63 = vmov 0  }
 0x1d6   :  { %v1056_v5 = vmul.f32 %v3355_v61, %v1016_v56  ;;  %v1082_v59 = vadd.f32 %v3359_v2, %v1062_v55  ;;  %v1083_v49 = vadd.f32 %v3359_v2, %v1063_v19  ;;  %v2079_v2 = vld [vmem:[%s3221_s4 + $0x8] sm:$0xff]  }
 0x1d7   :  { %v1009_v26 = vpop.permute.xlu1 %1008  ;;  %v1089_v54 = vmax.f32 %v1081_v47, 0.0 }
 0x1d8   :  { %v1064_v42 = vadd.f32 %v1056_v5, %v984_v43  ;;  %v1017_v29 = vsel %vm1012_vm8, %v1007_v60, %v1009_v26  ;;  %v1011_v35 = vpop.permute.xlu0 %1010  ;;  %v1090_v24 = vmax.f32 %v1082_v59, 0.0  ;;  %v1091_v25 = vmax.f32 %v1083_v49, 0.0  ;;  %v2078_v5 = vld [vmem:[%s3221_s4] sm:$0xff]  }
 0x1d9   :  { %v1057_v39 = vmul.f32 %v2758_v16, %v1017_v29  ;;  %v1018_v53 = vsel %vm1012_vm8, %v1009_v26, %v1011_v35  ;;  %v1030_v44 = vsel %vm1012_vm8, %v1011_v35, %v1005_v57 }
 0x1da   :  { %v1084_v13 = vadd.f32 %v3360_v27, %v1064_v42  ;;  %v1058_v58 = vmul.f32 %v2762_v21, %v1018_v53  ;;  %v1059_v15 = vmul.f32 %v2766_v10, %v1030_v44 }
 0x1db   :  { %v1065_v45 = vadd.f32 %v1057_v39, %v985_v12 }
 0x1dc   :  { %v1092_v30 = vmax.f32 %v1084_v13, 0.0  ;;  %v1066_v0 = vadd.f32 %v1058_v58, %v986_v33  ;;  %v1067_v40 = vadd.f32 %v1059_v15, %v987_v52 }
 0x1dd   :  { %v1085_v57 = vadd.f32 %v3360_v27, %v1065_v45 }
 0x1de   :  { %v1086_v37 = vadd.f32 %v3360_v27, %v1066_v0  ;;  %v1087_v46 = vadd.f32 %v3360_v27, %v1067_v40  ;;  %v1101_v8 = vpack.c.bf16 %v1092_v30, %v1088_v17 }
 0x1df   :  { %v1093_v60 = vmax.f32 %v1085_v57, 0.0 }
 0x1e0   :  { %v1094_v22 = vmax.f32 %v1086_v37, 0.0  ;;  %v1095_v56 = vmax.f32 %v1087_v46, 0.0 }
 0x1e1   :  { %v1102_v48 = vpack.c.bf16 %v1093_v60, %v1089_v54 }
 0x1e2   :  { %v1104_v43 = vpack.c.bf16 %v1095_v56, %v1091_v25  ;;  %v1103_v34 = vpack.c.bf16 %v1094_v22, %v1090_v24 }
 0x1e3   :  { %1127 = vmatprep.subr.bf16.mxu0 %v1102_v48 }
 0x1e4   :  { %1188 = vmatprep.subr.bf16.mxu1 %v1104_v43  ;;  %1128 = vmatpush1.bf16.msra.mxu0 %v1101_v8 }
 0x1e5   :  { %1189 = vmatpush1.bf16.msra.mxu1 %v1103_v34 }
 0x1e7   :  { %2042 = vmatmul.mubr.msk.bf16.vlgmr.msra.gmra.mrb[36].mxu0 %vm526_vm2, %v2078_v5 }
 0x1e8   :  { %2045 = vmatmul.mubr.msk.bf16.vlgmr.msra.gmra.mrb[36].mxu1 %vm526_vm2, %v2078_v5  ;;  %1169 = vmatprep.mubr.bf16.mxu0 %v3361_v63  ;;  %v2959_v49 = vpop.permute.xlu1 %1520 }
 0x1e9   :  { %1230 = vmatprep.mubr.bf16.mxu1 %v3361_v63 }
 0x1ef   :  { %2043 = vmatmul.mubr.msk.bf16.gmra.mrb[40].mxu0 %vm526_vm2, %v2079_v2 }
 0x1f0   :  { %2046 = vmatmul.mubr.msk.bf16.gmra.mrb[40].mxu1 %vm526_vm2, %v2079_v2  ;;  %1179 = vmatprep.mubr.bf16.mxu0 %v3361_v63 }
 0x1f1   :  { %1240 = vmatprep.mubr.bf16.mxu1 %v3361_v63 }
 0x1f7   :  { %2044 = vmatmul.mubr.msk.bf16.gmra.mrb[44].mxu0 %vm526_vm2, %v2080_v31 }
 0x1f8   :  { %2047 = vmatmul.mubr.msk.bf16.gmra.mrb[44].mxu1 %vm526_vm2, %v2080_v31  ;;  %1591 = vmatprep.mubr.bf16.mxu0 %v3361_v63 }
 0x1f9   :  { %1634 = vmatprep.mubr.bf16.mxu1 %v3361_v63 }
 0x2ba   :  { %v1161_v41 = vpop.f32.mrb[36].mxu0 }
 0x2bb   :  { %v1222_v55 = vpop.f32.mrb[36].mxu1  ;;  %1277 = vrot.lane.b32.xlu0 %v1161_v41, %s2100_s2  ;;  %v1163_v26 = vpop.f32.mrb[37].mxu0 }
 0x2bc   :  { %v1224_v52 = vpop.f32.mrb[37].mxu1  ;;  %v1165_v19 = vpop.f32.mrb[38].mxu0 }
 0x2bd   :  { %1274 = vrot.lane.b32.xlu1 %v1224_v52, %s2100_s2  ;;  %v1226_v42 = vpop.f32.mrb[38].mxu1  ;;  %v1167_v29 = vpop.f32.mrb[39].mxu0 }
 0x2be   :  { %v1228_v35 = vpop.f32.mrb[39].mxu1 }
 0x2bf   :  { %1281 = vrot.lane.b32.xlu0 %v1222_v55, %s2100_s2 }
 0x2c1   :  { %1279 = vrot.lane.b32.xlu1 %v1163_v26, %s2100_s2 }
 0x2c2   :  { %v2919_v12 = vpop.f32.mrb[40].mxu0 }
 0x2c3   :  { %1256 = vrot.lane.b32.xlu0 %v1161_v41, %s2099_s23  ;;  %v2922_v39 = vpop.f32.mrb[41].mxu0  ;;  %v2924_v53 = vpop.f32.mrb[40].mxu1 }
 0x2c4   :  { %v2926_v44 = vpop.f32.mrb[41].mxu1  ;;  %v1175_v33 = vpop.f32.mrb[42].mxu0 }
 0x2c5   :  { %1250 = vrot.lane.b32.xlu1 %v1224_v52, %s2099_s23  ;;  %v1177_v27 = vpop.f32.mrb[43].mxu0  ;;  %v1236_v13 = vpop.f32.mrb[42].mxu1 }
 0x2c6   :  { %v1238_v58 = vpop.f32.mrb[43].mxu1 }
 0x2c7   :  { %1260 = vrot.lane.b32.xlu0 %v1222_v55, %s2099_s23 }
 0x2c9   :  { %1258 = vrot.lane.b32.xlu1 %v1163_v26, %s2099_s23 }
 0x2ca   :  { %v1181_v15 = vpop.f32.mrb[44].mxu0 }
 0x2cb   :  { %1318 = vrot.lane.b32.xlu0 %v1165_v19, %s2101_s24  ;;  %v1183_v17 = vpop.f32.mrb[45].mxu0  ;;  %v1242_v59 = vpop.f32.mrb[44].mxu1 }
 0x2cc   :  { %v1244_v45 = vpop.f32.mrb[45].mxu1  ;;  %v1185_v47 = vpop.f32.mrb[46].mxu0 }
 0x2cd   :  { %1312 = vrot.lane.b32.xlu1 %v1228_v35, %s2101_s24  ;;  %v1186_v30 = vpop.f32.mrb[47].mxu0  ;;  %v1246_v0 = vpop.f32.mrb[46].mxu1 }
 0x2ce   :  { %v1247_v40 = vpop.f32.mrb[47].mxu1 }
 0x2cf   :  { %1322 = vrot.lane.b32.xlu0 %v1226_v42, %s2101_s24 }
 0x2d1   :  { %1320 = vrot.lane.b32.xlu1 %v1167_v29, %s2101_s24 }
 0x2d3   :  { %1343 = vrot.lane.b32.xlu0 %v1165_v19, %s2102_s25 }
 0x2d5   :  { %1340 = vrot.lane.b32.xlu1 %v1228_v35, %s2102_s25 }
 0x2d7   :  { %1347 = vrot.lane.b32.xlu0 %v1226_v42, %s2102_s25 }
 0x2d9   :  { %1345 = vrot.lane.b32.xlu1 %v1167_v29, %s2102_s25 }
 0x2db   :  { %1387 = vrot.lane.b32.xlu0 %v2922_v39, %s2103_s26 }
 0x2dd   :  { %1385 = vrot.lane.b32.xlu1 %v2919_v12, %s2103_s26 }
 0x2df   :  { %1391 = vrot.lane.b32.xlu0 %v2926_v44, %s2103_s26 }
 0x2e1   :  { %1389 = vrot.lane.b32.xlu1 %v2924_v53, %s2103_s26 }
 0x2e3   :  { %1428 = vrot.lane.b32.xlu0 %v1177_v27, %s2104_s27 }
 0x2e5   :  { %1426 = vrot.lane.b32.xlu1 %v1175_v33, %s2104_s27 }
 0x2e7   :  { %1432 = vrot.lane.b32.xlu0 %v1238_v58, %s2104_s27 }
 0x2e9   :  { %1430 = vrot.lane.b32.xlu1 %v1236_v13, %s2104_s27 }
 0x2eb   :  { %1453 = vrot.lane.b32.xlu0 %v1177_v27, %s2105_s28 }
 0x2ed   :  { %1451 = vrot.lane.b32.xlu1 %v1175_v33, %s2105_s28 }
 0x2ef   :  { %1457 = vrot.lane.b32.xlu0 %v1238_v58, %s2105_s28 }
 0x2f1   :  { %1455 = vrot.lane.b32.xlu1 %v1236_v13, %s2105_s28 }
 0x2f3   :  { %1492 = vrot.lane.b32.xlu0 %v1181_v15, %s2106_s0 }
 0x2f5   :  { %1494 = vrot.lane.b32.xlu1 %v1183_v17, %s2106_s0 }
 0x2f7   :  { %1496 = vrot.lane.b32.xlu0 %v1242_v59, %s2106_s0 }
 0x2f9   :  { %1498 = vrot.lane.b32.xlu1 %v1244_v45, %s2106_s0 }
 0x32d   :  { %v1278_v57 = vpop.permute.xlu0 %1277 }
 0x32f   :  { %v1275_v37 = vpop.permute.xlu1 %1274 }
 0x330   :  { %v1290_v2 = vsel %vm526_vm2, %v1275_v37, %v1278_v57 }
 0x331   :  { %v1282_v46 = vpop.permute.xlu0 %1281  ;;  %v1291_v55 = vmul.f32 %v1290_v2, %v2529_v50 }
 0x332   :  { %v1285_v41 = vsel %vm526_vm2, %v1282_v46, %v1275_v37 }
 0x333   :  { %v1280_v8 = vpop.permute.xlu1 %1279  ;;  %v1294_v52 = vmul.f32 %v1285_v41, %v2532_v6  ;;  %v1299_v35 = vrot.slane %v1291_v55, 4 }
 0x334   :  { %v1283_v19 = vsel %vm526_vm2, %v1278_v57, %v1280_v8  ;;  %v1284_v47 = vsel %vm526_vm2, %v1280_v8, %v1282_v46  ;;  %v3362_v57 = vld [vmem:[#allocation20_spill] sm:$0xff] }
 0x335   :  { %v1257_v54 = vpop.permute.xlu0 %1256  ;;  %v1292_v58 = vmul.f32 %v1283_v19, %v2521_v14  ;;  %v1302_v45 = vrot.slane %v1294_v52, 4  ;;  %v1293_v55 = vmul.f32 %v1284_v47, %v2526_v3  ;;  %v3366_v3 = vld [vmem:[#allocation30_spill] sm:$0xff] }
 0x337   :  { %v1251_v60 = vpop.permute.xlu1 %1250  ;;  %v1300_v52 = vrot.slane %v1292_v58, 4 }
 0x338   :  { %v1269_v29 = vsel %vm454_vm1, %v1251_v60, %v1257_v54 }
 0x339   :  { %v1261_v24 = vpop.permute.xlu0 %1260  ;;  %v1270_v30 = vmul.f32 %v1269_v29, %v2509_v1 }
 0x33a   :  { %v1264_v33 = vsel %vm454_vm1, %v1261_v24, %v1251_v60 }
 0x33b   :  { %v1259_v22 = vpop.permute.xlu1 %1258  ;;  %v1273_v37 = vmul.f32 %v1264_v33, %v3362_v57  ;;  %v1307_v29 = vadd.f32 %v1299_v35, %v1270_v30  ;;  %v3367_v30 = vld [vmem:[#allocation33_spill] sm:$0xff] }
 0x33c   :  { %v1262_v15 = vsel %vm454_vm1, %v1257_v54, %v1259_v22 }
 0x33d   :  { %v1319_v25 = vpop.permute.xlu0 %1318 }
 0x33f   :  { %v1313_v56 = vpop.permute.xlu1 %1312 }
 0x340   :  { %v1331_v0 = vsel %vm606_vm3, %v1313_v56, %v1319_v25 }
 0x341   :  { %v1323_v48 = vpop.permute.xlu0 %1322  ;;  %v1332_v19 = vmul.f32 %v1331_v0, %v2543_v36 }
 0x342   :  { %v1326_v60 = vsel %vm606_vm3, %v1323_v48, %v1313_v56 }
 0x343   :  { %v1321_v43 = vpop.permute.xlu1 %1320  ;;  %v1336_v35 = vadd.f32 %v1332_v19, %v1307_v29  ;;  %v3369_v19 = vld [vmem:[#allocation36_spill] sm:$0xff] }
 0x344   :  { %v1324_v2 = vsel %vm606_vm3, %v1319_v25, %v1321_v43  ;;  %v3363_v25 = vld [vmem:[#allocation28_spill] sm:$0xff] }
 0x345   :  { %v1344_v34 = vpop.permute.xlu0 %1343  ;;  %v1335_v33 = vmul.f32 %v1326_v60, %v3363_v25  ;;  %v3368_v25 = vld [vmem:[#allocation27_spill] sm:$0xff] }
 0x347   :  { %v1341_v5 = vpop.permute.xlu1 %1340 }
 0x348   :  { %v1356_v27 = vsel %vm686_vm4, %v1341_v5, %v1344_v34 }
 0x349   :  { %v1348_v63 = vpop.permute.xlu0 %1347  ;;  %v1357_v54 = vmul.f32 %v1356_v27, %v2555_v7  ;;  %v3364_v27 = vld [vmem:[#allocation26_spill] sm:$0xff] }
 0x34a   :  { %v1351_v17 = vsel %vm686_vm4, %v1348_v63, %v1341_v5  ;;  %v1263_v5 = vsel %vm454_vm1, %v1259_v22, %v1261_v24  ;;  %v1333_v57 = vmul.f32 %v1324_v2, %v3364_v27 }
 0x34b   :  { %v1346_v31 = vpop.permute.xlu1 %1345  ;;  %v1360_v41 = vmul.f32 %v1351_v17, %v2560_v62  ;;  %v3365_v17 = vld [vmem:[#allocation22_spill] sm:$0xff] }
 0x34c   :  { %v1349_v59 = vsel %vm686_vm4, %v1344_v34, %v1346_v31  ;;  %v1271_v34 = vmul.f32 %v1262_v15, %v2515_v4  ;;  %v1350_v56 = vsel %vm686_vm4, %v1346_v31, %v1348_v63  ;;  %v1310_v15 = vadd.f32 %v1302_v45, %v1273_v37 }
 0x34d   :  { %v1388_v26 = vpop.permute.xlu0 %1387  ;;  %v1358_v46 = vmul.f32 %v1349_v59, %v2549_v32  ;;  %v1272_v62 = vmul.f32 %v1263_v5, %v3365_v17  ;;  %v1325_v59 = vsel %vm606_vm3, %v1321_v43, %v1323_v48  ;;  %v1365_v32 = vrot.slane %v1357_v54, 4 }
 0x34e   :  { %v1308_v47 = vadd.f32 %v1300_v52, %v1271_v34  ;;  %v1368_v58 = vrot.slane %v1360_v41, 4  ;;  %v1359_v0 = vmul.f32 %v1350_v56, %v3366_v3  ;;  %v1301_v31 = vrot.slane %v1293_v55, 4 }
 0x34f   :  { %v1386_v42 = vpop.permute.xlu1 %1385  ;;  %v1366_v7 = vrot.slane %v1358_v46, 4  ;;  %v1339_v2 = vadd.f32 %v1335_v33, %v1310_v15  ;;  %v1334_v4 = vmul.f32 %v1325_v59, %v3368_v25  ;;  %v1373_v48 = vadd.f32 %v1365_v32, %v1336_v35  ;;  %v3370_v33 = vld [vmem:[#allocation34_spill] sm:$0xff]  ;;  %v3371_v15 = vld [vmem:[#allocation35_spill] sm:$0xff] }
 0x350   :  { %v1393_v24 = vsel %vm772_vm5, %v1386_v42, %v1388_v26  ;;  %v1337_v1 = vadd.f32 %v1333_v57, %v1308_v47  ;;  %v1309_v5 = vadd.f32 %v1301_v31, %v1272_v62  ;;  %v1367_v34 = vrot.slane %v1359_v0, 4 }
 0x351   :  { %v1392_v13 = vpop.permute.xlu0 %1391  ;;  %v1402_v60 = vmul.f32 %v1393_v24, %v3367_v30  ;;  %v1376_v54 = vadd.f32 %v1368_v58, %v1339_v2 }
 0x352   :  { %v1401_v45 = vsel %vm772_vm5, %v1392_v13, %v1386_v42  ;;  %v1374_v41 = vadd.f32 %v1366_v7, %v1337_v1  ;;  %v1338_v29 = vadd.f32 %v1334_v4, %v1309_v5  ;;  %v1377_v42 = vadd.f32 %v1373_v48, %v2919_v12 }
 0x353   :  { %v1390_v40 = vpop.permute.xlu1 %1389  ;;  %v1410_v52 = vrot.slane %v1402_v60, 4  ;;  %v1405_v56 = vmul.f32 %v1401_v45, %v3369_v19  ;;  %v1380_v7 = vadd.f32 %v1376_v54, %v2926_v44 }
 0x354   :  { %v1394_v43 = vsel %vm772_vm5, %v1388_v26, %v1390_v40  ;;  %v1395_v46 = vsel %vm772_vm5, %v1390_v40, %v1392_v13  ;;  %v1375_v59 = vadd.f32 %v1367_v34, %v1338_v29  ;;  %v1378_v1 = vadd.f32 %v1374_v41, %v2922_v39 }
 0x355   :  { %v1429_v8 = vpop.permute.xlu0 %1428  ;;  %v1403_v24 = vmul.f32 %v1394_v43, %v3370_v33  ;;  %v1404_v62 = vmul.f32 %v1395_v46, %v3371_v15  ;;  %v1418_v4 = vadd.f32 %v1410_v52, %v1377_v42  ;;  %v1413_v47 = vrot.slane %v1405_v56, 4 }
 0x357   :  { %v1427_v22 = vpop.permute.xlu1 %1426  ;;  %v1411_v0 = vrot.slane %v1403_v24, 4  ;;  %v1412_v44 = vrot.slane %v1404_v62, 4  ;;  %v1421_v41 = vadd.f32 %v1413_v47, %v1380_v7 }
 0x358   :  { %v1434_v32 = vsel %vm852_vm6, %v1427_v22, %v1429_v8 }
 0x359   :  { %v1433_v63 = vpop.permute.xlu0 %1432  ;;  %v1443_v31 = vmul.f32 %v1434_v32, %v3350_v38  ;;  %v1419_v46 = vadd.f32 %v1411_v0, %v1378_v1 }
 0x35a   :  { %v1442_v35 = vsel %vm852_vm6, %v1433_v63, %v1427_v22  ;;  %v1379_v22 = vadd.f32 %v1375_v59, %v2924_v53 }
 0x35b   :  { %v1431_v37 = vpop.permute.xlu1 %1430  ;;  %v1447_v52 = vadd.f32 %v1443_v31, %v1418_v4 }
 0x35c   :  { %v1435_v58 = vsel %vm852_vm6, %v1429_v8, %v1431_v37  ;;  %v1436_v60 = vsel %vm852_vm6, %v1431_v37, %v1433_v63  ;;  %v1446_v63 = vmul.f32 %v1442_v35, %v3351_v9  ;;  %v1420_v29 = vadd.f32 %v1412_v44, %v1379_v22 }
 0x35d   :  { %v1454_v55 = vpop.permute.xlu0 %1453  ;;  %v1444_v48 = vmul.f32 %v1435_v58, %v3352_v20  ;;  %v1445_v37 = vmul.f32 %v1436_v60, %v3353_v51 }
 0x35e   :  { %v1450_v53 = vadd.f32 %v1446_v63, %v1421_v41 }
 0x35f   :  { %v1452_v57 = vpop.permute.xlu1 %1451  ;;  %v1448_v62 = vadd.f32 %v1444_v48, %v1419_v46  ;;  %v1449_v59 = vadd.f32 %v1445_v37, %v1420_v29 }
 0x360   :  { %v1459_v26 = vsel %vm932_vm7, %v1452_v57, %v1454_v55 }
 0x361   :  { %v1468_v13 = vmul.f32 %v1459_v26, %v3354_v11  ;;  %v1458_v40 = vpop.permute.xlu0 %1457 }
 0x362   :  { %v1467_v12 = vsel %vm932_vm7, %v1458_v40, %v1452_v57 }
 0x363   :  { %v1456_v2 = vpop.permute.xlu1 %1455  ;;  %v1471_v39 = vmul.f32 %v1467_v12, %v3358_v28  ;;  %v1476_v8 = vrot.slane %v1468_v13, 4 }
 0x364   :  { %v1460_v45 = vsel %vm932_vm7, %v1454_v55, %v1456_v2  ;;  %v1461_v5 = vsel %vm932_vm7, %v1456_v2, %v1458_v40 }
 0x365   :  { %v1469_v43 = vmul.f32 %v1460_v45, %v3356_v23  ;;  %v1470_v54 = vmul.f32 %v1461_v5, %v3357_v18  ;;  %v1493_v34 = vpop.permute.xlu0 %1492  ;;  %v1479_v24 = vrot.slane %v1471_v39, 4  ;;  %v1484_v32 = vadd.f32 %v1476_v8, %v1447_v52 }
 0x367   :  { %v1477_v55 = vrot.slane %v1469_v43, 4  ;;  %v1495_v56 = vpop.permute.xlu1 %1494  ;;  %v1478_v57 = vrot.slane %v1470_v54, 4  ;;  %v1487_v47 = vadd.f32 %v1479_v24, %v1450_v53 }
 0x368   :  { %v1500_v42 = vsel %vm1012_vm8, %v1493_v34, %v1495_v56 }
 0x369   :  { %v1509_v26 = vmul.f32 %v1500_v42, %v3355_v61  ;;  %v1497_v13 = vpop.permute.xlu0 %1496  ;;  %v1485_v58 = vadd.f32 %v1477_v55, %v1448_v62  ;;  %v1486_v12 = vadd.f32 %v1478_v57, %v1449_v59  ;;  %v2081_v55 = vld [vmem:[%s3223_s6] sm:$0x1f]  }
 0x36a   :  { %v1501_v40 = vsel %vm1012_vm8, %v1495_v56, %v1497_v13 }
 0x36b   :  { %v1513_v7 = vadd.f32 %v1509_v26, %v1484_v32  ;;  %v1510_v1 = vmul.f32 %v1501_v40, %v2758_v16  ;;  %v1499_v4 = vpop.permute.xlu1 %1498 }
 0x36c   :  { %v1502_v0 = vsel %vm1012_vm8, %v1497_v13, %v1499_v4  ;;  %v1508_v31 = vsel %vm1012_vm8, %v1499_v4, %v1493_v34 }
 0x36d   :  { %v1514_v35 = vadd.f32 %v1510_v1, %v1485_v58  ;;  %v1511_v60 = vmul.f32 %v1502_v0, %v2762_v21  ;;  %v1512_v2 = vmul.f32 %v1508_v31, %v2766_v10  ;;  %v1523_v44 = vadd.f32 %v2959_v49, %v1513_v7  ;;  %v3376_v10 = vld [vmem:[#allocation28_spill] sm:$0xff] }
 0x36f   :  { %v1524_v39 = vadd.f32 %v2959_v49, %v1514_v35  ;;  %v1515_v45 = vadd.f32 %v1511_v60, %v1486_v12  ;;  %v1516_v5 = vadd.f32 %v1512_v2, %v1487_v47  ;;  %v1527_v48 = vmax.f32 %v1523_v44, 0.0 }
 0x371   :  { %v1528_v8 = vmax.f32 %v1524_v39, 0.0  ;;  %v1526_v43 = vadd.f32 %v2959_v49, %v1516_v5  ;;  %v1533_v54 = vpack.c.bf16 %v1527_v48, %v1527_v48  ;;  %v1525_v22 = vadd.f32 %v2959_v49, %v1515_v45 }
 0x372   :  { %v13_v49 = vstv %s3224_s7 }
 0x373   :  { %v1530_v34 = vmax.f32 %v1526_v43, 0.0  ;;  %v1534_v63 = vpack.c.bf16 %v1528_v8, %v1528_v8  ;;  %v1529_v37 = vmax.f32 %v1525_v22, 0.0  ;;  %v1548_v41 = vsel %vm1546_vm9, %v1533_v54, 0  ;;  %14 = vst [vmem:[#allocation2] sm:$0x1] %v13_v49 }
 0x375   :  { %2049 = vmatprep.subr.msk.bf16.mxu0 %vm1546_vm9, %v1534_v63  ;;  %v1536_v46 = vpack.c.bf16 %v1530_v34, %v1530_v34  ;;  %v1535_v52 = vpack.c.bf16 %v1529_v37, %v1529_v37 }
 0x376   :  { %1560 = vmatpush1.bf16.msra.mxu0 %v1548_v41 }
 0x377   :  { %2051 = vmatprep.subr.msk.bf16.mxu1 %vm1546_vm9, %v1536_v46  ;;  %v1554_v56 = vsel %vm1546_vm9, %v1535_v52, 0 }
 0x378   :  { %1603 = vmatpush1.bf16.msra.mxu1 %v1554_v56 }
 0x379   :  { %2050 = vmatmul.mubr.msk.bf16.vlgmr.msra.gmra.mrb[48].mxu0 %vm1542_vm10, %v2081_v55 }
 0x37a   :  { %v1933_v53 = vld [vmem:[#allocation2] sm:$0x1] }
 0x37b   :  { %2052 = vmatmul.mubr.msk.bf16.vlgmr.msra.gmra.mrb[48].mxu1 %vm1542_vm10, %v2081_v55 }
 0x44c   :  { %v3039_v29 = vpop.f32.mrb[48].mxu0 }
 0x44d   :  { %1793 = vrot.lane.b32.xlu0 %v3039_v29, %s2103_s26  ;;  %1673 = vrot.lane.b32.xlu1 %v3039_v29, %s2100_s2  ;;  %v3045_v24 = vpop.f32.mrb[49].mxu0 }
 0x44e   :  { %v3047_v57 = vpop.f32.mrb[48].mxu1  ;;  %v1597_v42 = vpop.f32.mrb[50].mxu0 }
 0x44f   :  { %v3049_v62 = vpop.f32.mrb[49].mxu1  ;;  %v1599_v32 = vpop.f32.mrb[51].mxu0 }
 0x450   :  { %v1640_v26 = vpop.f32.mrb[50].mxu1 }
 0x451   :  { %1797 = vrot.lane.b32.xlu0 %v3047_v57, %s2103_s26  ;;  %1677 = vrot.lane.b32.xlu1 %v3047_v57, %s2100_s2  ;;  %v1642_v13 = vpop.f32.mrb[51].mxu1 }
 0x455   :  { %1830 = vrot.lane.b32.xlu0 %v3039_v29, %s2104_s27  ;;  %1652 = vrot.lane.b32.xlu1 %v3039_v29, %s2099_s23 }
 0x459   :  { %1834 = vrot.lane.b32.xlu0 %v3047_v57, %s2104_s27  ;;  %1656 = vrot.lane.b32.xlu1 %v3047_v57, %s2099_s23 }
 0x45d   :  { %1867 = vrot.lane.b32.xlu0 %v3039_v29, %s2105_s28  ;;  %1710 = vrot.lane.b32.xlu1 %v3039_v29, %s2101_s24 }
 0x461   :  { %1871 = vrot.lane.b32.xlu0 %v3047_v57, %s2105_s28  ;;  %1714 = vrot.lane.b32.xlu1 %v3047_v57, %s2101_s24 }
 0x465   :  { %1670 = vrot.lane.b32.xlu0 %v3049_v62, %s2100_s2  ;;  %1747 = vrot.lane.b32.xlu1 %v3039_v29, %s2102_s25 }
 0x469   :  { %1675 = vrot.lane.b32.xlu0 %v3045_v24, %s2100_s2  ;;  %1751 = vrot.lane.b32.xlu1 %v3047_v57, %s2102_s25 }
 0x46d   :  { %1646 = vrot.lane.b32.xlu0 %v3049_v62, %s2099_s23  ;;  %1795 = vrot.lane.b32.xlu1 %v3045_v24, %s2103_s26 }
 0x471   :  { %1654 = vrot.lane.b32.xlu0 %v3045_v24, %s2099_s23  ;;  %1799 = vrot.lane.b32.xlu1 %v3049_v62, %s2103_s26 }
 0x475   :  { %1707 = vrot.lane.b32.xlu0 %v3049_v62, %s2101_s24  ;;  %1832 = vrot.lane.b32.xlu1 %v3045_v24, %s2104_s27 }
 0x479   :  { %1712 = vrot.lane.b32.xlu0 %v3045_v24, %s2101_s24  ;;  %1836 = vrot.lane.b32.xlu1 %v3049_v62, %s2104_s27 }
 0x47d   :  { %1744 = vrot.lane.b32.xlu0 %v3049_v62, %s2102_s25  ;;  %1869 = vrot.lane.b32.xlu1 %v3045_v24, %s2105_s28 }
 0x481   :  { %1749 = vrot.lane.b32.xlu0 %v3045_v24, %s2102_s25  ;;  %1873 = vrot.lane.b32.xlu1 %v3049_v62, %s2105_s28 }
 0x485   :  { %1936 = vperm.xlu0 %2067, %v1933_v53   ;;  %1908 = vrot.lane.b32.xlu1 %v1597_v42, %s2106_s0 }
 0x489   :  { %1910 = vrot.lane.b32.xlu0 %v1599_v32, %s2106_s0  ;;  %1912 = vrot.lane.b32.xlu1 %v1640_v26, %s2106_s0 }
 0x48d   :  { %1914 = vrot.lane.b32.xlu0 %v1642_v13, %s2106_s0 }
 0x4bf   :  { %v3107_v59 = vpop.permute.xlu0 %1793  ;;  %v1674_v40 = vpop.permute.xlu1 %1673 }
 0x4c3   :  { %v3109_v58 = vpop.permute.xlu0 %1797  ;;  %v1678_v7 = vpop.permute.xlu1 %1677 }
 0x4c7   :  { %v3111_v1 = vpop.permute.xlu0 %1830  ;;  %v1653_v4 = vpop.permute.xlu1 %1652 }
 0x4cb   :  { %v3113_v47 = vpop.permute.xlu0 %1834  ;;  %v1657_v12 = vpop.permute.xlu1 %1656 }
 0x4cf   :  { %v3115_v0 = vpop.permute.xlu0 %1867  ;;  %v1711_v31 = vpop.permute.xlu1 %1710 }
 0x4d3   :  { %v3117_v35 = vpop.permute.xlu0 %1871  ;;  %v1715_v60 = vpop.permute.xlu1 %1714 }
 0x4d7   :  { %v1671_v2 = vpop.permute.xlu0 %1670  ;;  %v1748_v44 = vpop.permute.xlu1 %1747 }
 0x4d8   :  { %v1681_v22 = vsel %vm526_vm2, %v1678_v7, %v1671_v2  ;;  %v1686_v34 = vsel %vm526_vm2, %v1671_v2, %v1674_v40 }
 0x4d9   :  { %v1687_v46 = vmul.f32 %v1686_v34, %v2529_v50  ;;  %v1690_v52 = vmul.f32 %v1681_v22, %v2532_v6 }
 0x4db   :  { %v1676_v39 = vpop.permute.xlu0 %1675  ;;  %v1752_v45 = vpop.permute.xlu1 %1751  ;;  %v1695_v22 = vrot.slane %v1687_v46, 1  ;;  %v1698_v34 = vrot.slane %v1690_v52, 1 }
 0x4dc   :  { %v1679_v41 = vsel %vm526_vm2, %v1674_v40, %v1676_v39  ;;  %v1680_v42 = vsel %vm526_vm2, %v1676_v39, %v1678_v7 }
 0x4dd   :  { %v1688_v32 = vmul.f32 %v1679_v41, %v2521_v14  ;;  %v3372_v14 = vld [vmem:[#allocation19_spill] sm:$0xff] }
 0x4df   :  { %v1647_v5 = vpop.permute.xlu0 %1646  ;;  %v1796_v48 = vpop.permute.xlu1 %1795 }
 0x4e0   :  { %v1665_v49 = vsel %vm454_vm1, %v1647_v5, %v1653_v4  ;;  %v1660_v7 = vsel %vm454_vm1, %v1657_v12, %v1647_v5 }
 0x4e1   :  { %v1666_v39 = vmul.f32 %v1665_v49, %v3372_v14 }
 0x4e3   :  { %v1655_v8 = vpop.permute.xlu0 %1654  ;;  %v3119_v43 = vpop.permute.xlu1 %1799  ;;  %v1703_v14 = vadd.f32 %v1695_v22, %v1666_v39 }
 0x4e4   :  { %v1658_v26 = vsel %vm454_vm1, %v1653_v4, %v1655_v8  ;;  %v1659_v4 = vsel %vm454_vm1, %v1655_v8, %v1657_v12  ;;  %v3377_v8 = vld [vmem:[#allocation20_spill] sm:$0xff] }
 0x4e7   :  { %v1708_v54 = vpop.permute.xlu0 %1707  ;;  %v3123_v63 = vpop.permute.xlu1 %1832 }
 0x4e8   :  { %v1723_v55 = vsel %vm606_vm3, %v1708_v54, %v1711_v31  ;;  %v1718_v13 = vsel %vm606_vm3, %v1715_v60, %v1708_v54  ;;  %v3373_v54 = vld [vmem:[#allocation21_spill] sm:$0xff] }
 0x4e9   :  { %v1724_v40 = vmul.f32 %v1723_v55, %v2543_v36  ;;  %v1667_v41 = vmul.f32 %v1658_v26, %v3373_v54  ;;  %v3374_v55 = vld [vmem:[#allocation31_spill] sm:$0xff]  ;;  %v1727_v21 = vmul.f32 %v1718_v13, %v3376_v10  ;;  %v1669_v26 = vmul.f32 %v1660_v7, %v3377_v8  ;;  %v3379_v10 = vld [vmem:[#allocation29_spill] sm:$0xff] }
 0x4ea   :  { %v1784_v8 = vrot.slane %v3049_v62, 4 }
 0x4eb   :  { %v1713_v37 = vpop.permute.xlu0 %1712  ;;  %v3138_v2 = vpop.permute.xlu1 %1836  ;;  %v1732_v16 = vrot.slane %v1724_v40, 2  ;;  %v1706_v39 = vadd.f32 %v1698_v34, %v1669_v26  ;;  %v1783_v26 = vrot.slane %v3047_v57, 4 }
 0x4ec   :  { %v1716_v56 = vsel %vm606_vm3, %v1711_v31, %v1713_v37  ;;  %v1717_v50 = vsel %vm606_vm3, %v1713_v37, %v1715_v60  ;;  %v3375_v37 = vld [vmem:[#allocation24_spill] sm:$0xff] }
 0x4ed   :  { %v1725_v6 = vmul.f32 %v1716_v56, %v3364_v27  ;;  %v1689_v27 = vmul.f32 %v1680_v42, %v3375_v37  ;;  %v1696_v56 = vrot.slane %v1688_v32, 1  ;;  %v1726_v46 = vmul.f32 %v1717_v50, %v3368_v25 }
 0x4ee   :  { %v1735_v50 = vrot.slane %v1727_v21, 2  ;;  %v1740_v22 = vadd.f32 %v1732_v16, %v1703_v14  ;;  %v1803_v21 = vsel %vm772_vm5, %v3109_v58, %v3119_v43  ;;  %v1809_v16 = vsel %vm772_vm5, %v3119_v43, %v3107_v59 }
 0x4ef   :  { %v1745_v53 = vpop.permute.xlu0 %1744  ;;  %v1733_v5 = vrot.slane %v1725_v6, 2  ;;  %v1704_v42 = vadd.f32 %v1696_v56, %v1667_v41  ;;  %v1697_v40 = vrot.slane %v1689_v27, 1  ;;  %v1802_v6 = vsel %vm772_vm5, %v1796_v48, %v3109_v58 }
 0x4f0   :  { %v1760_v31 = vsel %vm686_vm4, %v1745_v53, %v1748_v44  ;;  %v1755_v36 = vsel %vm686_vm4, %v1752_v45, %v1745_v53  ;;  %v1668_v53 = vmul.f32 %v1659_v4, %v3365_v17  ;;  %v1782_v27 = vrot.slane %v3045_v24, 4 }
 0x4f1   :  { %v1761_v60 = vmul.f32 %v1760_v31, %v3374_v55  ;;  %v3378_v31 = vld [vmem:[#allocation32_spill] sm:$0xff]  ;;  %v1870_v55 = vpop.permute.xlu1 %1869  ;;  %v1741_v17 = vadd.f32 %v1733_v5, %v1704_v42  ;;  %v1839_v24 = vsel %vm852_vm6, %v3123_v63, %v3113_v47 }
 0x4f2   :  { %v1764_v54 = vmul.f32 %v1755_v36, %v3378_v31  ;;  %v1705_v4 = vadd.f32 %v1697_v40, %v1668_v53 }
 0x4f3   :  { %v1750_v52 = vpop.permute.xlu0 %1749  ;;  %v1769_v32 = vrot.slane %v1761_v60, 3  ;;  %v1781_v60 = vrot.slane %v3039_v29, 4  ;;  %v1838_v29 = vsel %vm852_vm6, %v3111_v1, %v3123_v63  ;;  %v1840_v63 = vsel %vm852_vm6, %v3113_v47, %v3138_v2 }
 0x4f4   :  { %v1753_v49 = vsel %vm686_vm4, %v1748_v44, %v1750_v52  ;;  %v1754_v12 = vsel %vm686_vm4, %v1750_v52, %v1752_v45  ;;  %v1801_v44 = vsel %vm772_vm5, %v3107_v59, %v1796_v48  ;;  %v1734_v45 = vrot.slane %v1726_v46, 2 }
 0x4f5   :  { %v1762_v13 = vmul.f32 %v1753_v49, %v3379_v10  ;;  %v1763_v25 = vmul.f32 %v1754_v12, %v3366_v3  ;;  %v1772_v41 = vrot.slane %v1764_v54, 3  ;;  %v1777_v37 = vadd.f32 %v1769_v32, %v1740_v22  ;;  %v1874_v52 = vpop.permute.xlu1 %1873 }
 0x4f6   :  { %v1743_v48 = vadd.f32 %v1735_v50, %v1706_v39  ;;  %v1742_v56 = vadd.f32 %v1734_v45, %v1705_v4  ;;  %v1810_v34 = vmul.f32 %v1801_v44, %v3367_v30  ;;  %v1811_v46 = vmul.f32 %v1802_v6, %v3370_v33 }
 0x4f7   :  { %v1770_v7 = vrot.slane %v1762_v13, 3  ;;  %v1771_v36 = vrot.slane %v1763_v25, 3  ;;  %v1812_v49 = vmul.f32 %v1803_v21, %v3371_v15  ;;  %v1813_v59 = vmul.f32 %v1809_v16, %v3369_v19 }
 0x4f8   :  { %v1780_v58 = vadd.f32 %v1772_v41, %v1743_v48  ;;  %v1789_v43 = vadd.f32 %v1781_v60, %v1777_v37  ;;  %v1847_v30 = vmul.f32 %v1838_v29, %v3350_v38  ;;  %v1848_v33 = vmul.f32 %v1839_v24, %v3352_v20  ;;  %v3381_v48 = vld [vmem:[#allocation16_spill] sm:$0xff] }
 0x4f9   :  { %v1778_v3 = vadd.f32 %v1770_v7, %v1741_v17  ;;  %v1779_v5 = vadd.f32 %v1771_v36, %v1742_v56  ;;  %v1818_v14 = vrot.slane %v1810_v34, 5  ;;  %v1819_v53 = vrot.slane %v1811_v46, 5  ;;  %v1909_v32 = vpop.permute.xlu1 %1908 }
 0x4fa   :  { %v1846_v19 = vsel %vm852_vm6, %v3138_v2, %v3111_v1  ;;  %v1792_v15 = vadd.f32 %v1784_v8, %v1780_v58  ;;  %v1875_v38 = vsel %vm932_vm7, %v3115_v0, %v1870_v55  ;;  %v1876_v20 = vsel %vm932_vm7, %v1870_v55, %v3117_v35 }
 0x4fb   :  { %v1790_v12 = vadd.f32 %v1782_v27, %v1778_v3  ;;  %v1791_v62 = vadd.f32 %v1783_v26, %v1779_v5  ;;  %v1820_v31 = vrot.slane %v1812_v49, 5  ;;  %v1821_v57 = vrot.slane %v1813_v59, 5  ;;  %v3380_v27 = vld [vmem:[#allocation49_spill] sm:$0xff]  ;;  %v3382_v59 = vld [vmem:[#allocation50_spill] sm:$0xff] }
 0x4fc   :  { %v1826_v54 = vadd.f32 %v1818_v14, %v1789_v43  ;;  %v1855_v10 = vrot.slane %v1847_v30, 6  ;;  %v1856_v13 = vrot.slane %v1848_v33, 6  ;;  %v1849_v47 = vmul.f32 %v1840_v63, %v3353_v51 }
 0x4fd   :  { %v1827_v42 = vadd.f32 %v1819_v53, %v1790_v12  ;;  %v1850_v25 = vmul.f32 %v1846_v19, %v3351_v9  ;;  %v1884_v1 = vmul.f32 %v1875_v38, %v3354_v11  ;;  %v1885_v2 = vmul.f32 %v1876_v20, %v3356_v23  ;;  %v1913_v23 = vpop.permute.xlu1 %1912 }
 0x4fe   :  { %v1877_v40 = vsel %vm932_vm7, %v3117_v35, %v1874_v52  ;;  %v1883_v55 = vsel %vm932_vm7, %v1874_v52, %v3115_v0  ;;  %v1828_v50 = vadd.f32 %v1820_v31, %v1791_v62  ;;  %v1829_v45 = vadd.f32 %v1821_v57, %v1792_v15 }
 0x4ff   :  { %v1863_v6 = vadd.f32 %v1855_v10, %v1826_v54  ;;  %v1864_v22 = vadd.f32 %v1856_v13, %v1827_v42  ;;  %v1857_v17 = vrot.slane %v1849_v47, 6  ;;  %v1858_v7 = vrot.slane %v1850_v25, 6 }
 0x500   :  { %v1886_v51 = vmul.f32 %v1877_v40, %v3357_v18  ;;  %v1887_v9 = vmul.f32 %v1883_v55, %v3358_v28  ;;  %v1892_v11 = vrot.slane %v1884_v1, 7  ;;  %v1893_v39 = vrot.slane %v1885_v2, 7  ;;  %v3384_v40 = vld [vmem:[#allocation13_spill] sm:$0xff] }
 0x501   :  { %v1865_v41 = vadd.f32 %v1857_v17, %v1828_v50  ;;  %v1866_v35 = vadd.f32 %v1858_v7, %v1829_v45  ;;  %v3385_v17 = vlaneseq }
 0x502   :  { %v1900_v60 = vadd.f32 %v1892_v11, %v1863_v6  ;;  %v1901_v37 = vadd.f32 %v1893_v39, %v1864_v22  ;;  %v1894_v16 = vrot.slane %v1886_v51, 7  ;;  %v1895_v18 = vrot.slane %v1887_v9, 7 }
 0x503   :  { %vm2002_vm11 = vcmp.lt.s32.totalorder %v3385_v17, 512 }
 0x504   :  { %v1937_v44 = vpop.permute.xlu0 %1936  ;;  %v1902_v29 = vadd.f32 %v1894_v16, %v1865_v41  ;;  %v1903_v24 = vadd.f32 %v1895_v18, %v1866_v35 }
 0x505   :  { %v1942_v28 = vrot.slane %v1937_v44, %v3381_v48 }
 0x508   :  { %v1911_v4 = vpop.permute.xlu0 %1910 }
 0x509   :  { %v1916_v36 = vsel %vm1012_vm8, %v1909_v32, %v1911_v4  ;;  %v1917_v0 = vsel %vm1012_vm8, %v1911_v4, %v1913_v23 }
 0x50a   :  { %v1925_v3 = vmul.f32 %v1916_v36, %v3355_v61  ;;  %v1926_v21 = vmul.f32 %v1917_v0, %v3380_v27  ;;  %v3383_v61 = vld [vmem:[#allocation51_spill] sm:$0xff] }
 0x50c   :  { %v1929_v56 = vadd.f32 %v1925_v3, %v1900_v60  ;;  %v1930_v34 = vadd.f32 %v1926_v21, %v1901_v37  ;;  %v1915_v46 = vpop.permute.xlu0 %1914 }
 0x50d   :  { %v1918_v52 = vsel %vm1012_vm8, %v1913_v23, %v1915_v46  ;;  %v1924_v58 = vsel %vm1012_vm8, %v1915_v46, %v1909_v32  ;;  %v2107_v32 = vmov 1966171168  }
 0x50e   :  { %v1943_v5 = vadd.f32 %v1942_v28, %v1929_v56  ;;  %v1944_v49 = vadd.f32 %v1942_v28, %v1930_v34  ;;  %v1927_v43 = vmul.f32 %v1918_v52, %v3382_v59  ;;  %v1928_v12 = vmul.f32 %v1924_v58, %v3383_v61 }
 0x50f   :  { %v1978_v10 = vunpack.c.l.s4 %v2107_v32 }
 0x510   :  { %v2053_v30 = vmul.f32 -1.442695, %v1943_v5  ;;  %v2054_v33 = vmul.f32 -1.442695, %v1944_v49  ;;  %v1931_v8 = vadd.f32 %v1927_v43, %v1902_v29  ;;  %v1932_v26 = vadd.f32 %v1928_v12, %v1903_v24 }
 0x511   :  { %v1979_v47 = vunpack.c.0.s8 %v1978_v10 }
 0x512   :  { %2082 = vpow2.f32 %v2053_v30  ;;  %v1945_v14 = vadd.f32 %v1942_v28, %v1931_v8  ;;  %v1946_v53 = vadd.f32 %v1942_v28, %v1932_v26 }
 0x513   :  { %2084 = vpow2.f32 %v2054_v33  ;;  %v1982_v55 = vsub.s32 %v1979_v47, %v3384_v40 }
 0x514   :  { %v2055_v63 = vmul.f32 -1.442695, %v1945_v14  ;;  %v2056_v19 = vmul.f32 -1.442695, %v1946_v53 }
 0x516   :  { %2086 = vpow2.f32 %v2055_v63 }
 0x517   :  { %2088 = vpow2.f32 %v2056_v19 }
 0x51c   :  { %v2083_v15 = vpop.eup %2082 }
 0x51d   :  { %v2085_v38 = vpop.eup %2084  ;;  %v1959_v20 = vadd.f32 1.0, %v2083_v15 }
 0x51e   :  { %v1960_v62 = vadd.f32 1.0, %v2085_v38 }
 0x51f   :  { %2090 = vrcp.f32 %v1959_v20 }
 0x520   :  { %v2087_v31 = vpop.eup %2086  ;;  %2092 = vrcp.f32 %v1960_v62 }
 0x521   :  { %v2089_v57 = vpop.eup %2088  ;;  %v1961_v54 = vadd.f32 1.0, %v2087_v31 }
 0x522   :  { %v1962_v42 = vadd.f32 1.0, %v2089_v57 }
 0x523   :  { %2094 = vrcp.f32 %v1961_v54 }
 0x524   :  { %2096 = vrcp.f32 %v1962_v42 }
 0x529   :  { %v2091_v13 = vpop.eup %2090 }
 0x52a   :  { %v2093_v25 = vpop.eup %2092 }
 0x52b   :  { %v1975_v1 = vcombine.low %v2091_v13, %v2093_v25 }
 0x52d   :  { %v2095_v2 = vpop.eup %2094  ;;  %v1983_v45 = vrot.slane %v1975_v1, %v1982_v55 }
 0x52e   :  { %v2097_v44 = vpop.eup %2096 }
 0x52f   :  { %v1976_v50 = vcombine.low %v2095_v2, %v2097_v44 }
 0x531   :  { %v1990_v6 = vrot.slane %v1976_v50, %v1982_v55 }
 0x533   :  { %v1991_v22 = vcombine.low %v1983_v45, %v1990_v6 }
 0x535   :  { %v1998_v7 = vrot.slane %v1991_v22, %v1982_v55 }
 0x537   :  { %2004 = vst.msk [vmem:[%s3225_s8] sm:$0xf] %vm2002_vm11, %v1998_v7 }

</bundles_post_ra>
